<compile_context>
chip_gen: v6e
topology: v6e:2x2x1
jax: 0.10.0
libtpu: 0.0.40
codegen_flags: <defaults>
</compile_context>

<pallas_src>
import jax
import jax.numpy as jnp
import numpy as np
from jax.experimental import pallas as pl
from jax.experimental.pallas import tpu as pltpu

EPS = 1e-5
LANES = 128  # lane width used for the packed output / replicated predictor weight


# ------------------------------- kernel ------------------------------------ #
def deep_cross_kernel(
    x_ref,      # (tile_b, F)           streamed per grid step
    vec_ref,    # (2, F)                [bn0_scale, bn0_bias]
    w1c_ref,    # (F, H1+F)             [w1 (BN1-folded) | wc0]      pre-transposed
    b1c_ref,    # (1, H1+F)             [b1 (folded)     | bc0]
    w2c_ref,    # (H1+F, H2+F)          blockdiag(w2 (BN2-folded), wc1)
    b2c_ref,    # (1, H2+F)             [b2 (folded)     | bc1]
    wp_ref,     # (F+H2, 128)           predictor col (cross BN folded), replicated
    bp_ref,     # (1, 128)              folded predictor bias, replicated
    out_ref,    # (tile_b//128, 128)    lane-packed logits (squeezed leading grid dim)
):
    F = x_ref.shape[1]
    H1 = w1c_ref.shape[1] - F
    H2 = w2c_ref.shape[1] - F
    R = out_ref.shape[0]            # tile_b // 128
    tb = x_ref.shape[0]

    def mm(a, w_ref):
        # bf16 weights -> cast activation to bf16 for the MXU, accumulate in f32.
        return jnp.dot(a.astype(w_ref.dtype), w_ref[...],
                       preferred_element_type=jnp.float32)

    vec = vec_ref[...]
    s0, t0 = vec[0:1, :], vec[1:2, :]

    # init_layers: folded eval BatchNorm1d (Dropout == identity in eval mode)
    x0 = x_ref[...].astype(jnp.float32) * s0 + t0

    # ---- stage 1 (one MXU push): x0 @ [w1 | wc0] ----
    cat1 = mm(x0, w1c_ref) + b1c_ref[...]            # (tb, H1+F)
    h = cat1[:, :H1]
    h = h * jax.nn.sigmoid(h)                        # SiLU (Linear+BN folded)
    xc = x0 * cat1[:, H1:] + x0                      # cross layer 0

    # ---- stage 2 (one MXU push): [h | xc] @ blockdiag(w2, wc1) ----
    cat2 = mm(jnp.concatenate([h, xc], axis=-1), w2c_ref) + b2c_ref[...]  # (tb, H2+F)
    d = cat2[:, :H2]
    deep = d * jax.nn.sigmoid(d)                     # deep features
    xc = x0 * cat2[:, H2:] + xc                      # cross layer 1

    # ---- stage 3 (one MXU push): predictor over cat([cross(BN-folded), deep]) ----
    # Weight column replicated to 128 lanes host-side, so big[b, j] == logit[b] for
    # every j; computing 128 columns costs the same MXU time as 1 column.
    big = mm(jnp.concatenate([xc, deep], axis=-1), wp_ref)   # (tb, 128)

    # Lane-pack: keep big[b, b % 128], sublane-sum each 128-row group -> (R, 128).
    b_idx = jax.lax.broadcasted_iota(jnp.int32, (tb, LANES), 0)
    j_idx = jax.lax.broadcasted_iota(jnp.int32, (tb, LANES), 1)
    masked = jnp.where((b_idx % LANES) == j_idx, big, 0.0)
    rows = [jnp.sum(masked[r * LANES:(r + 1) * LANES, :], axis=0, keepdims=True)
            for r in range(R)]
    packed = rows[0] if R == 1 else jnp.concatenate(rows, axis=0)   # (R, 128)

    # 5 * tanh applied AFTER packing (tiny lane-dense slab -> tiny EUP epilogue).
    out_ref[...] = 5.0 * jnp.tanh(packed + bp_ref[...])


# ------------------------------ wrapper ------------------------------------ #
def _pick_tile_b(batch, preferred=1024):
    """Multiple of 128 (lane packing); >=2 grid tiles when batch allows (v7x 2 TCs)."""
    half = -(-batch // 2)                 # cdiv(batch, 2)
    half = -(-half // 128) * 128          # round up to 128
    return max(128, min(preferred, half))


def deep_cross_forward(x, kp, *, tile_b=None):
    """Batch-tiled Pallas forward. `kp` comes from prepare_kernel_params()."""
    B, F = x.shape
    H1 = kp["w1c"].shape[1] - F
    H2 = kp["w2c"].shape[1] - F

    if tile_b is None:
        tile_b = _pick_tile_b(B)
    tile_b = max(128, (tile_b // 128) * 128)     # lane packing needs a multiple of 128
    R = tile_b // 128
    num_tiles = pl.cdiv(B, tile_b)
    Bp = num_tiles * tile_b

    w_dtype = kp["w1c"].dtype
    xp = x.astype(w_dtype) if x.dtype != w_dtype else x
    if Bp != B:
        # Only taken when tile_b does not divide B; pad rows produce finite garbage
        # (tanh keeps everything bounded) that the final slice drops.
        xp = jnp.pad(xp, ((0, Bp - B), (0, 0)))

    const2 = lambda i: (0, 0)  # weights stay resident across the batch grid

    out = pl.pallas_call(
        deep_cross_kernel,
        out_shape=jax.ShapeDtypeStruct((num_tiles, R, LANES), jnp.float32),
        grid=(num_tiles,),
        in_specs=[
            # x is the only per-step streamed input.
            # TODO(synk): add pipeline_mode=pl.Buffered(3) here if xprof shows exposed DMA.
            pl.BlockSpec((tile_b, F), lambda i: (i, 0)),
            pl.BlockSpec((2, F), const2),                 # packed bn0 scale/bias
            pl.BlockSpec((F, H1 + F), const2),            # fused stage-1 weights
            pl.BlockSpec((1, H1 + F), const2),            # fused stage-1 bias
            pl.BlockSpec((H1 + F, H2 + F), const2),       # fused stage-2 weights
            pl.BlockSpec((1, H2 + F), const2),            # fused stage-2 bias
            pl.BlockSpec((F + H2, LANES), const2),        # replicated predictor weight
            pl.BlockSpec((1, LANES), const2),             # replicated predictor bias
        ],
        out_specs=pl.BlockSpec((None, R, LANES), lambda i: (i, 0, 0)),
        compiler_params=pltpu.CompilerParams(
            dimension_semantics=("parallel",),            # shard batch tiles over TCs
        ),
    )(xp, kp["vec"], kp["w1c"], kp["b1c"], kp["w2c"], kp["b2c"],
      kp["wp_rep"], kp["bp_row"])

    return out.reshape(Bp, 1)[:B]


# ------------------------- host-side param prep ----------------------------- #
def prepare_kernel_params(p, input_features, hidden_dims, output_dim,
                          dtype=jnp.float32):
    """Fold eval-mode BNs, pre-transpose & fuse weights, replicate the single
    predictor column to 128 lanes, optionally cast matmul weights to bf16."""
    assert output_dim == 1  # TODO(synk): generalize the lane-packed output to output_dim > 1
    assert len(hidden_dims) == 2, "demo kernel is specialized to 2 hidden layers"
    F = input_features
    H1, H2 = hidden_dims

    def bn_fold(g, b, m, v):
        s = g / jnp.sqrt(v + EPS)
        return s, b - m * s

    s0, t0 = bn_fold(p["bn0_g"], p["bn0_b"], p["bn0_m"], p["bn0_v"])   # (1, F)
    s1, t1 = bn_fold(p["bn1_g"], p["bn1_b"], p["bn1_m"], p["bn1_v"])   # (1, H1)
    s2, t2 = bn_fold(p["bn2_g"], p["bn2_b"], p["bn2_m"], p["bn2_v"])   # (1, H2)
    sc, tc = bn_fold(p["bnc_g"], p["bnc_b"], p["bnc_m"], p["bnc_v"])   # (1, F)

    w1f = p["w1"].T * s1                      # (F, H1)   BN1-folded, pre-transposed
    b1f = p["b1"] * s1 + t1                   # (1, H1)
    w2f = p["w2"].T * s2                      # (H1, H2)  BN2-folded, pre-transposed
    b2f = p["b2"] * s2 + t2                   # (1, H2)
    wc0t = p["wc0"].T                         # (F, F)
    wc1t = p["wc1"].T                         # (F, F)

    kp = {}
    kp["vec"] = jnp.concatenate([s0, t0], axis=0)                        # (2, F)
    kp["w1c"] = jnp.concatenate([w1f, wc0t], axis=1).astype(dtype)       # (F, H1+F)
    kp["b1c"] = jnp.concatenate([b1f, p["bc0"]], axis=1)                 # (1, H1+F)
    w2c = jnp.concatenate(
        [jnp.concatenate([w2f, jnp.zeros((H1, F), jnp.float32)], axis=1),
         jnp.concatenate([jnp.zeros((F, H2), jnp.float32), wc1t], axis=1)],
        axis=0)                                                          # (H1+F, H2+F)
    kp["w2c"] = w2c.astype(dtype)
    kp["b2c"] = jnp.concatenate([b2f, p["bc1"]], axis=1)                 # (1, H2+F)

    # predictor over cat([cross, deep]); fold cross_post BN, replicate to 128 lanes
    wp_c = p["wp"][:, :F].T                   # (F, 1)
    wp_d = p["wp"][:, F:].T                   # (H2, 1)
    bp = p["bp"] + tc @ wp_c                  # (1, 1)  fold BN shift (un-scaled wp_c)
    wp_c = wp_c * sc.T                        # fold BN scale per input-feature row
    wp_vec = jnp.concatenate([wp_c, wp_d], axis=0)                       # (F+H2, 1)
    kp["wp_rep"] = jnp.tile(wp_vec, (1, LANES)).astype(dtype)            # (F+H2, 128)
    kp["bp_row"] = jnp.tile(bp, (1, LANES))                              # (1, 128)
    return kp


# --------------------------- synthetic params ------------------------------- #
def init_params(key, input_features, hidden_dims, output_dim):
    """Deterministic synthetic parameters (eval-mode BN stats included)."""
    assert len(hidden_dims) == 2
    H1, H2 = hidden_dims
    F = input_features
    ks = jax.random.split(key, 9)

    def lin(k, out_f, in_f):
        bound = 1.0 / float(np.sqrt(in_f))
        kw, kb = jax.random.split(k)
        w = jax.random.uniform(kw, (out_f, in_f), jnp.float32, -bound, bound)
        b = jax.random.uniform(kb, (1, out_f), jnp.float32, -bound, bound)
        return w, b

    def bn(k, dim):
        k1, k2, k3, k4 = jax.random.split(k, 4)
        g = jax.random.uniform(k1, (1, dim), jnp.float32, 0.5, 1.5)
        b = jax.random.uniform(k2, (1, dim), jnp.float32, -0.1, 0.1)
        m = jax.random.uniform(k3, (1, dim), jnp.float32, -0.2, 0.2)
        v = jax.random.uniform(k4, (1, dim), jnp.float32, 0.5, 1.5)
        return g, b, m, v

    p = {}
    p["bn0_g"], p["bn0_b"], p["bn0_m"], p["bn0_v"] = bn(ks[0], F)
    p["w1"], p["b1"] = lin(ks[1], H1, F)
    p["bn1_g"], p["bn1_b"], p["bn1_m"], p["bn1_v"] = bn(ks[2], H1)
    p["w2"], p["b2"] = lin(ks[3], H2, H1)
    p["bn2_g"], p["bn2_b"], p["bn2_m"], p["bn2_v"] = bn(ks[4], H2)
    p["wc0"], p["bc0"] = lin(ks[5], F, F)
    p["wc1"], p["bc1"] = lin(ks[6], F, F)
    p["bnc_g"], p["bnc_b"], p["bnc_m"], p["bnc_v"] = bn(ks[7], F)
    p["wp"], p["bp"] = lin(ks[8], output_dim, H2 + F)   # predictor over cat([cross, deep])
    return p


# ------------------------------ references ---------------------------------- #
def reference_forward_folded(x, kp, xp=jnp):
    """Same folded/fused operands as the kernel. xp=np runs the math in float64."""
    if xp is np:
        to = lambda a: np.asarray(a, dtype=np.float64)
    else:
        to = lambda a: jnp.asarray(a, dtype=jnp.float32)
    x = to(x)
    vec = to(kp["vec"]); s0, t0 = vec[0:1], vec[1:2]
    w1c, b1c = to(kp["w1c"]), to(kp["b1c"])
    w2c, b2c = to(kp["w2c"]), to(kp["b2c"])
    wp, bp = to(kp["wp_rep"])[:, :1], to(kp["bp_row"])[:, :1]
    F = x.shape[1]
    H1 = w1c.shape[1] - F
    H2 = w2c.shape[1] - F
    silu = lambda z: z / (1.0 + xp.exp(-z))
    x0 = x * s0 + t0
    cat1 = x0 @ w1c + b1c
    h = silu(cat1[:, :H1])
    xc = x0 * cat1[:, H1:] + x0
    cat2 = xp.concatenate([h, xc], axis=-1) @ w2c + b2c
    deep = silu(cat2[:, :H2])
    xc = x0 * cat2[:, H2:] + xc
    logit = xp.concatenate([xc, deep], axis=-1) @ wp + bp
    return 5.0 * xp.tanh(logit)


def _np64(a):
    return np.asarray(a, dtype=np.float64)


def reference_unfolded_np(x, p):
    """Original (un-folded) module math in float64 numpy — semantic ground truth."""
    def bn(z, g, b, m, v):
        return (z - _np64(m)) / np.sqrt(_np64(v) + EPS) * _np64(g) + _np64(b)

    def silu(z):
        return z / (1.0 + np.exp(-z))

    x = _np64(x)
    x0 = bn(x, p["bn0_g"], p["bn0_b"], p["bn0_m"], p["bn0_v"])
    h = silu(bn(x0 @ _np64(p["w1"]).T + _np64(p["b1"]),
                p["bn1_g"], p["bn1_b"], p["bn1_m"], p["bn1_v"]))
    deep = silu(bn(h @ _np64(p["w2"]).T + _np64(p["b2"]),
                   p["bn2_g"], p["bn2_b"], p["bn2_m"], p["bn2_v"]))
    xc = x0
    xc = x0 * (xc @ _np64(p["wc0"]).T + _np64(p["bc0"])) + xc
    xc = x0 * (xc @ _np64(p["wc1"]).T + _np64(p["bc1"])) + xc
    cross = bn(xc, p["bnc_g"], p["bnc_b"], p["bnc_m"], p["bnc_v"])
    feats = np.concatenate([cross, deep], axis=-1)
    return 5.0 * np.tanh(feats @ _np64(p["wp"]).T + _np64(p["bp"]))


# --------------------------------- main ------------------------------------- #
if __name__ == "__main__":
    B, F = 256, 32
    hidden_dims = [64, 32]
    output_dim = 1

    key = jax.random.PRNGKey(0)
    kx, kparam = jax.random.split(key)
    x = jax.random.normal(kx, (B, F), jnp.float32)

    raw = init_params(kparam, F, hidden_dims, output_dim)
    kp = prepare_kernel_params(raw, F, hidden_dims, output_dim)  # f32 path

    # f32 kernel run (B=256 -> tile_b=128, 2 grid tiles: exercises >=2-tile megacore path)
    out = jax.block_until_ready(deep_cross_forward(x, kp))
    assert out.shape == (B, output_dim), out.shape

    # 1) folding/fusion algebra check (float64, no TPU precision involved)
    ref64_unfolded = reference_unfolded_np(np.asarray(x), raw)
    ref64_folded = reference_forward_folded(np.asarray(x), kp, xp=np)
    assert np.allclose(ref64_folded, ref64_unfolded, atol=1e-4, rtol=1e-4)

    # 2) kernel vs pure-JAX reference using the same folded/fused f32 operands
    ref32 = reference_forward_folded(x, kp, xp=jnp)
    assert jnp.allclose(out, ref32, atol=1e-4, rtol=1e-4), (
        float(jnp.max(jnp.abs(out - ref32))))

    # 3) bf16 weight/input storage path (v6e/v7x): f32 MXU accumulate, f32 elementwise
    kp16 = prepare_kernel_params(raw, F, hidden_dims, output_dim, dtype=jnp.bfloat16)
    out16 = jax.block_until_ready(deep_cross_forward(x, kp16))
    assert out16.shape == (B, output_dim), out16.shape
    assert bool(jnp.all(jnp.isfinite(out16)))
    assert float(jnp.max(jnp.abs(out16 - ref32))) < 0.75  # loose sanity for bf16 storage

    print("KERNEL_OK")
</pallas_src>

<mosaic_0001>
module attributes {stable_mosaic.version = 11 : i64} {
  func.func @deep_cross_kernel(%arg0: i32, %arg1: memref<128x32xf32, #tpu.memory_space<vmem>>, %arg2: memref<2x32xf32, #tpu.memory_space<vmem>>, %arg3: memref<32x96xf32, #tpu.memory_space<vmem>>, %arg4: memref<1x96xf32, #tpu.memory_space<vmem>>, %arg5: memref<96x64xf32, #tpu.memory_space<vmem>>, %arg6: memref<1x64xf32, #tpu.memory_space<vmem>>, %arg7: memref<64x128xf32, #tpu.memory_space<vmem>>, %arg8: memref<1x128xf32, #tpu.memory_space<vmem>>, %arg9: memref<1x1x128xf32, #tpu.memory_space<vmem>>) attributes {dimension_semantics = [#tpu.dimension_semantics<parallel>], iteration_bounds = array<i64: 2>, scalar_prefetch = 0 : i64, scratch_operands = 0 : i64, tpu.core_type = #tpu.core_type<tc>, window_params = [{transform_indices = @transform_0, window_bounds = array<i64: 128, 32>}, {pipeline_mode = #tpu.pipeline_mode<synchronous>, transform_indices = @transform_1, window_bounds = array<i64: 2, 32>}, {pipeline_mode = #tpu.pipeline_mode<synchronous>, transform_indices = @transform_2, window_bounds = array<i64: 32, 96>}, {pipeline_mode = #tpu.pipeline_mode<synchronous>, transform_indices = @transform_3, window_bounds = array<i64: 1, 96>}, {pipeline_mode = #tpu.pipeline_mode<synchronous>, transform_indices = @transform_4, window_bounds = array<i64: 96, 64>}, {pipeline_mode = #tpu.pipeline_mode<synchronous>, transform_indices = @transform_5, window_bounds = array<i64: 1, 64>}, {pipeline_mode = #tpu.pipeline_mode<synchronous>, transform_indices = @transform_6, window_bounds = array<i64: 64, 128>}, {pipeline_mode = #tpu.pipeline_mode<synchronous>, transform_indices = @transform_7, window_bounds = array<i64: 1, 128>}, {transform_indices = @transform_8, window_bounds = array<i64: 1, 1, 128>}]} {
    %c0 = arith.constant 0 : index
    %c0_0 = arith.constant 0 : index
    %0 = vector.load %arg2[%c0, %c0_0] : memref<2x32xf32, #tpu.memory_space<vmem>>, vector<2x32xf32>
    %1 = vector.extract_strided_slice %0 {offsets = [0, 0], sizes = [1, 32], strides = [1, 1]} : vector<2x32xf32> to vector<1x32xf32>
    %2 = vector.extract_strided_slice %0 {offsets = [1, 0], sizes = [1, 32], strides = [1, 1]} : vector<2x32xf32> to vector<1x32xf32>
    %c0_1 = arith.constant 0 : index
    %c0_2 = arith.constant 0 : index
    %3 = vector.load %arg1[%c0_1, %c0_2] : memref<128x32xf32, #tpu.memory_space<vmem>>, vector<128x32xf32>
    %4 = vector.broadcast %1 : vector<1x32xf32> to vector<128x32xf32>
    %5 = arith.mulf %3, %4 : vector<128x32xf32>
    %6 = vector.broadcast %2 : vector<1x32xf32> to vector<128x32xf32>
    %7 = arith.addf %5, %6 : vector<128x32xf32>
    %c0_3 = arith.constant 0 : index
    %c0_4 = arith.constant 0 : index
    %8 = vector.load %arg3[%c0_3, %c0_4] : memref<32x96xf32, #tpu.memory_space<vmem>>, vector<32x96xf32>
    %cst = arith.constant dense<0.000000e+00> : vector<128x96xf32>
    %9 = tpu.matmul %7, %8, %cst {dimension_numbers = #tpu.dot_dimension_numbers<[1], [0], [0], [1], [0, 0, 1, 1], [], []>} : vector<128x32xf32>, vector<32x96xf32>, vector<128x96xf32> -> vector<128x96xf32>
    %c0_5 = arith.constant 0 : index
    %c0_6 = arith.constant 0 : index
    %10 = vector.load %arg4[%c0_5, %c0_6] : memref<1x96xf32, #tpu.memory_space<vmem>>, vector<1x96xf32>
    %11 = vector.broadcast %10 : vector<1x96xf32> to vector<128x96xf32>
    %12 = arith.addf %9, %11 : vector<128x96xf32>
    %13 = vector.extract_strided_slice %12 {offsets = [0, 0], sizes = [128, 64], strides = [1, 1]} : vector<128x96xf32> to vector<128x64xf32>
    %14 = arith.negf %13 : vector<128x64xf32>
    %15 = math.exp %14 : vector<128x64xf32>
    %cst_7 = arith.constant 1.000000e+00 : f32
    %16 = vector.broadcast %cst_7 : f32 to vector<128x64xf32>
    %17 = arith.addf %16, %15 : vector<128x64xf32>
    %18 = arith.divf %16, %17 : vector<128x64xf32>
    %19 = arith.mulf %13, %18 : vector<128x64xf32>
    %20 = vector.extract_strided_slice %12 {offsets = [0, 64], sizes = [128, 32], strides = [1, 1]} : vector<128x96xf32> to vector<128x32xf32>
    %21 = arith.mulf %7, %20 : vector<128x32xf32>
    %22 = arith.addf %21, %7 : vector<128x32xf32>
    %23 = tpu.concatenate %19, %22 in 1 : vector<128x64xf32>, vector<128x32xf32> -> vector<128x96xf32>
    %c0_8 = arith.constant 0 : index
    %c0_9 = arith.constant 0 : index
    %24 = vector.load %arg5[%c0_8, %c0_9] : memref<96x64xf32, #tpu.memory_space<vmem>>, vector<96x64xf32>
    %cst_10 = arith.constant dense<0.000000e+00> : vector<128x64xf32>
    %25 = tpu.matmul %23, %24, %cst_10 {dimension_numbers = #tpu.dot_dimension_numbers<[1], [0], [0], [1], [0, 0, 1, 1], [], []>} : vector<128x96xf32>, vector<96x64xf32>, vector<128x64xf32> -> vector<128x64xf32>
    %c0_11 = arith.constant 0 : index
    %c0_12 = arith.constant 0 : index
    %26 = vector.load %arg6[%c0_11, %c0_12] : memref<1x64xf32, #tpu.memory_space<vmem>>, vector<1x64xf32>
    %27 = vector.broadcast %26 : vector<1x64xf32> to vector<128x64xf32>
    %28 = arith.addf %25, %27 : vector<128x64xf32>
    %29 = vector.extract_strided_slice %28 {offsets = [0, 0], sizes = [128, 32], strides = [1, 1]} : vector<128x64xf32> to vector<128x32xf32>
    %30 = arith.negf %29 : vector<128x32xf32>
    %31 = math.exp %30 : vector<128x32xf32>
    %cst_13 = arith.constant 1.000000e+00 : f32
    %32 = vector.broadcast %cst_13 : f32 to vector<128x32xf32>
    %33 = arith.addf %32, %31 : vector<128x32xf32>
    %34 = arith.divf %32, %33 : vector<128x32xf32>
    %35 = arith.mulf %29, %34 : vector<128x32xf32>
    %36 = vector.extract_strided_slice %28 {offsets = [0, 32], sizes = [128, 32], strides = [1, 1]} : vector<128x64xf32> to vector<128x32xf32>
    %37 = arith.mulf %7, %36 : vector<128x32xf32>
    %38 = arith.addf %37, %22 : vector<128x32xf32>
    %39 = tpu.concatenate %38, %35 in 1 : vector<128x32xf32>, vector<128x32xf32> -> vector<128x64xf32>
    %c0_14 = arith.constant 0 : index
    %c0_15 = arith.constant 0 : index
    %40 = vector.load %arg7[%c0_14, %c0_15] : memref<64x128xf32, #tpu.memory_space<vmem>>, vector<64x128xf32>
    %cst_16 = arith.constant dense<0.000000e+00> : vector<128x128xf32>
    %41 = tpu.matmul %39, %40, %cst_16 {dimension_numbers = #tpu.dot_dimension_numbers<[1], [0], [0], [1], [0, 0, 1, 1], [], []>} : vector<128x64xf32>, vector<64x128xf32>, vector<128x128xf32> -> vector<128x128xf32>
    %42 = tpu.iota {dimensions = array<i32: 0>} : vector<128x128xi32>
    %43 = tpu.iota {dimensions = array<i32: 1>} : vector<128x128xi32>
    %c128_i32 = arith.constant 128 : i32
    %c0_i32 = arith.constant 0 : i32
    %44 = arith.cmpi eq, %c128_i32, %c0_i32 : i32
    %c1_i32 = arith.constant 1 : i32
    %45 = arith.select %44, %c1_i32, %c128_i32 : i32
    %46 = vector.broadcast %45 : i32 to vector<128x128xi32>
    %47 = arith.remsi %42, %46 : vector<128x128xi32>
    %c0_i32_17 = arith.constant 0 : i32
    %48 = vector.broadcast %c0_i32_17 : i32 to vector<128x128xi32>
    %49 = arith.cmpi ne, %47, %48 : vector<128x128xi32>
    %c0_i32_18 = arith.constant 0 : i32
    %50 = vector.broadcast %c0_i32_18 : i32 to vector<128x128xi32>
    %51 = arith.cmpi slt, %47, %50 : vector<128x128xi32>
    %c0_i32_19 = arith.constant 0 : i32
    %52 = arith.cmpi slt, %45, %c0_i32_19 : i32
    %53 = vector.broadcast %52 : i1 to vector<128x128xi1>
    %54 = vector.broadcast %53 : vector<128x128xi1> to vector<128x128xi1>
    %55 = arith.xori %51, %54 : vector<128x128xi1>
    %56 = arith.andi %55, %49 : vector<128x128xi1>
    %57 = vector.broadcast %45 : i32 to vector<128x128xi32>
    %58 = arith.addi %47, %57 : vector<128x128xi32>
    %59 = arith.select %56, %58, %47 : vector<128x128xi1>, vector<128x128xi32>
    %60 = arith.cmpi eq, %59, %43 : vector<128x128xi32>
    %cst_20 = arith.constant 0.000000e+00 : f32
    %61 = vector.broadcast %cst_20 : f32 to vector<128x128xf32>
    %62 = arith.select %60, %41, %61 : vector<128x128xi1>, vector<128x128xf32>
    %cst_21 = arith.constant dense<0.000000e+00> : vector<128xf32>
    %63 = vector.multi_reduction <add>, %62, %cst_21 [0] : vector<128x128xf32> to vector<128xf32>
    %64 = vector.shape_cast %63 : vector<128xf32> to vector<1x128xf32>
    %c0_22 = arith.constant 0 : index
    %c0_23 = arith.constant 0 : index
    %65 = vector.load %arg8[%c0_22, %c0_23] : memref<1x128xf32, #tpu.memory_space<vmem>>, vector<1x128xf32>
    %66 = arith.addf %64, %65 : vector<1x128xf32>
    %67 = math.tanh %66 : vector<1x128xf32>
    %cst_24 = arith.constant 5.000000e+00 : f32
    %68 = vector.broadcast %cst_24 : f32 to vector<1x128xf32>
    %69 = arith.mulf %68, %67 : vector<1x128xf32>
    %c0_25 = arith.constant 0 : index
    %c0_26 = arith.constant 0 : index
    %c0_27 = arith.constant 0 : index
    %70 = vector.load %arg9[%c0_25, %c0_26, %c0_27] : memref<1x1x128xf32, #tpu.memory_space<vmem>>, vector<1x1x128xf32>
    %71 = vector.shape_cast %70 : vector<1x1x128xf32> to vector<1x128xf32>
    %72 = vector.shape_cast %69 : vector<1x128xf32> to vector<1x1x128xf32>
    tpu.vector_store %arg9[%c0_25, %c0_26, %c0_27], %72 {strides = array<i32>} : memref<1x1x128xf32, #tpu.memory_space<vmem>>, vector<1x1x128xf32>,
    return
  }
  func.func @transform_0(%arg0: i32) -> (i32, i32) {
    %c0_i32 = arith.constant 0 : i32
    %c0_i32_0 = arith.constant 0 : i32
    return %arg0, %c0_i32 : i32, i32
  }
  func.func @transform_1(%arg0: i32) -> (i32, i32) {
    %c0_i32 = arith.constant 0 : i32
    %c0_i32_0 = arith.constant 0 : i32
    %c0_i32_1 = arith.constant 0 : i32
    return %c0_i32, %c0_i32_0 : i32, i32
  }
  func.func @transform_2(%arg0: i32) -> (i32, i32) {
    %c0_i32 = arith.constant 0 : i32
    %c0_i32_0 = arith.constant 0 : i32
    %c0_i32_1 = arith.constant 0 : i32
    return %c0_i32, %c0_i32_0 : i32, i32
  }
  func.func @transform_3(%arg0: i32) -> (i32, i32) {
    %c0_i32 = arith.constant 0 : i32
    %c0_i32_0 = arith.constant 0 : i32
    %c0_i32_1 = arith.constant 0 : i32
    return %c0_i32, %c0_i32_0 : i32, i32
  }
  func.func @transform_4(%arg0: i32) -> (i32, i32) {
    %c0_i32 = arith.constant 0 : i32
    %c0_i32_0 = arith.constant 0 : i32
    %c0_i32_1 = arith.constant 0 : i32
    return %c0_i32, %c0_i32_0 : i32, i32
  }
  func.func @transform_5(%arg0: i32) -> (i32, i32) {
    %c0_i32 = arith.constant 0 : i32
    %c0_i32_0 = arith.constant 0 : i32
    %c0_i32_1 = arith.constant 0 : i32
    return %c0_i32, %c0_i32_0 : i32, i32
  }
  func.func @transform_6(%arg0: i32) -> (i32, i32) {
    %c0_i32 = arith.constant 0 : i32
    %c0_i32_0 = arith.constant 0 : i32
    %c0_i32_1 = arith.constant 0 : i32
    return %c0_i32, %c0_i32_0 : i32, i32
  }
  func.func @transform_7(%arg0: i32) -> (i32, i32) {
    %c0_i32 = arith.constant 0 : i32
    %c0_i32_0 = arith.constant 0 : i32
    %c0_i32_1 = arith.constant 0 : i32
    return %c0_i32, %c0_i32_0 : i32, i32
  }
  func.func @transform_8(%arg0: i32) -> (i32, i32, i32) {
    %c0_i32 = arith.constant 0 : i32
    %c0_i32_0 = arith.constant 0 : i32
    %c0_i32_1 = arith.constant 0 : i32
    return %arg0, %c0_i32, %c0_i32_0 : i32, i32, i32
  }
}

</mosaic_0001>

<bundles_post_ra>
// kernel: tpu_custom_call.1
= control target key start
LH: loop header
LB: loop body
LE: loop exit
PB: predicated region body
PF: predicated region fallthrough
CT: control target
= control target key end

     0   :  { %13 = vsyncpa [#allocation3], 0  ;;  %s3197_s0 = inlined_call_operand.vmem [shape: f32[256,32], index: 0, kind: input, shape index: {}]   ;;  %s3198_s1 = inlined_call_operand.vmem [shape: f32[2,32], index: 1, kind: input, shape index: {}]   ;;  %s3199_s2 = inlined_call_operand.vmem [shape: f32[32,96], index: 2, kind: input, shape index: {}]   ;;  %s3200_s3 = inlined_call_operand.vmem [shape: f32[1,96], index: 3, kind: input, shape index: {}]   ;;  %s3201_s4 = inlined_call_operand.vmem [shape: f32[96,64], index: 4, kind: input, shape index: {}]   ;;  %s3202_s5 = inlined_call_operand.vmem [shape: f32[1,64], index: 5, kind: input, shape index: {}]   ;;  %s3203_s6 = inlined_call_operand.vmem [shape: f32[64,128], index: 6, kind: input, shape index: {}]   ;;  %s3204_s7 = inlined_call_operand.vmem [shape: f32[1,128], index: 7, kind: input, shape index: {}]   ;;  %s3205_s8 = inlined_call_operand.hbm [shape: f32[2,1,128], index: 8, kind: output, shape index: {}]  }
   0x1   :  { %15 = vsyncpa [#allocation3 + $0x1], 0  ;;  %s2469_s27 = smov 0   ;;  %s2471_s28 = smov 0  }
   0x2   :  { %s2473_s29 = smov 0   ;;  %s2475_s30 = smov 0  }
   0x3 LB: > { %s1894_s9 = sadd.s32 4294967295, %s2418_s30   ;;  %s1895_s10 = sadd.s32 4294967294, %s2418_s30   ;;  %s2418_s30 = sphi %s2475_s30, %s3229_s30   ;;  %s2414_s29 = sphi %s2473_s29, %s3228_s29   ;;  %s2410_s28 = sphi %s2471_s28, %s3227_s28   ;;  %s2406_s27 = sphi %s2469_s27, %s3226_s27  }
   0x4   : > { %s2492_s11 = sadd.s32 1, %s2418_s30   ;;  %s201_s12 = sadd.s32 1, %s2414_s29 }
   0x5   : > { %s198_s13 = ssub.s32 %s2418_s30, %s2492_s11  ;;  %p211_p0 = scmp.ne.s32.totalorder %s2414_s29, %s2410_s28 }
   0x6   : > { %p199_p1 = scmp.eq.s32.totalorder %s198_s13, 0  ;;  %p212_p2 = scmp.eq.s32.totalorder %s1894_s9, 1 }
   0x7   : > { %p217_p3 = scmp.ne.s32.totalorder %s2410_s28, %s2406_s27  ;;  %p218_p4 = scmp.eq.s32.totalorder %s1895_s10, 1 }
   0x8   : > { %s2502_s14 = scalar_select %p199_p1, %s2414_s29, %s201_s12  }
   0x9   : > { %p2504_p5 = por %p212_p2, %p211_p0  ;;  %p2508_p6 = por %p218_p4, %p217_p3 }
   0xa   : > { %p1898_p7 = scmp.ge.s32.totalorder %s2418_s30, 1  ;;  %p266_p8 = scmp.lt.s32.totalorder %s2418_s30, 3 }
   0xc   : > { %p267_p9 = pnand %p1898_p7, %p266_p8 }
   0xe   : > { %270 = sbr.rel (%p267_p9) target bundleno = 1112 (0x458), region = 52 }
  0x13   : > { %v365_v0 = vld [vmem:[%s3199_s2 + $0x18] sm:$0xff]  ;;  %v364_v1 = vld [vmem:[%s3199_s2 + $0x10] sm:$0xff]  ;;  %s2520_s21 = sshll.u32 %s1894_s9, 4  ;;  %v3206_v2 = vlaneseq  ;;  %v363_v3 = vld [vmem:[%s3199_s2 + $0x8] sm:$0xff]  ;;  %vm373_vm0 = vcmask 261120   ;;  %s2420_s22 = smov 64  }
  0x14   : > { %2058 = vmatprep.subr.mxu0 %v365_v0  ;;  %2178 = vmatprep.subr.mxu1 %v365_v0  ;;  %p300_p10 = scmp.lt.s32.totalorder %s2520_s21, 31  ;;  %v305_v5 = vld [vmem:[%s3198_s1] sm:$0x3]  ;;  %vm839_vm1 = vcmask 523264   ;;  %vm875_vm2 = vcmask 785408   ;;  %s297_s17 = sand.u32 1, %s2410_s28  }
  0x15   : > { %2059 = vmatpush3.msra.mxu0 %v365_v0  ;;  %2182 = vmatpush3.msra.mxu1 %v365_v0  ;;  %v2527_v4 = vshrl.u32 %v3206_v2, 7  ;;  %v362_v6 = vld [vmem:[%s3199_s2] sm:$0xff]  ;;  %s1838_s23 = scalar_lea.hbm %s3205_s8, %s2520_s21  ;;  %s1828_s25 = scalar_lea.sflag [#allocation3], %s297_s17 }
  0x16   : > { %2060 = vmatprep.subr.mxu0 %v364_v1  ;;  %2179 = vmatprep.subr.mxu1 %v364_v1  ;;  %s301_s24 = scalar_select %p300_p10, %s2520_s21, 31  ;;  %v1901_v60 = vld [vmem:[%s3200_s3] ss:$0 sm:$0xff] }
  0x17   : > { %3215 = vst [vmem:[#allocation5_spill] sm:$0xff] %v2527_v4  ;;  %2061 = vmatpush3.msra.mxu0 %v364_v1  ;;  %2183 = vmatpush3.msra.mxu1 %v364_v1  ;;  %v324_v7 = vsub.s32 0, %v2527_v4  ;;  %v344_v8 = vsub.s32 1, %v2527_v4  ;;  %s2423_s9 = smov [#allocation2]  }
  0x18   : > { %2062 = vmatprep.subr.mxu0 %v363_v3  ;;  %2180 = vmatprep.subr.mxu1 %v363_v3  ;;  %s1900_s12 = sshll.u32 %s301_s24, 3  ;;  %s2421_s24 = smov 96  }
  0x19   : > { %2063 = vmatpush3.msra.mxu0 %v363_v3  ;;  %2184 = vmatpush3.msra.mxu1 %v363_v3  ;;  %s2541_s18 = scalar_lea.vmem %s3197_s0, %s1900_s12  ;;  %v325_v9 = vrot.slane %v305_v5, %v324_v7  ;;  %v2543_v10 = vrot.slane %v305_v5, %v344_v8  ;;  %s2422_s12 = smov 32  }
  0x1a   : > { %2064 = vmatprep.subr.mxu0 %v362_v6  ;;  %2181 = vmatprep.subr.mxu1 %v362_v6  ;;  %v306_v11 = vld [vmem:[%s2541_s18] sm:$0xff]  ;;  %v307_v12 = vld [vmem:[%s2541_s18 + $0x8] sm:$0xff]  ;;  %v308_v18 = vld [vmem:[%s2541_s18 + $0x10] sm:$0xff]  ;;  %s2362_s10 = sshll.u32 %s2423_s9, 4  ;;  %s2363_s10 = int_to_ptr.vmem [resolvable:$false] %s2362_s10 }
  0x1b   : > { %v314_v13 = vld [vmem:[%s2541_s18 + $0x40] sm:$0xff]  ;;  %2065 = vmatpush3.msra.mxu0 %v362_v6  ;;  %v326_v14 = vmul.f32 %v325_v9, %v306_v11  ;;  %2185 = vmatpush3.msra.mxu1 %v362_v6  ;;  %v327_v15 = vmul.f32 %v325_v9, %v307_v12  ;;  %v315_v17 = vld [vmem:[%s2541_s18 + $0x48] sm:$0xff]  ;;  %v309_v19 = vld [vmem:[%s2541_s18 + $0x18] sm:$0xff]  ;;  %v328_v21 = vmul.f32 %v325_v9, %v308_v18 }
  0x1c   : > { %v334_v16 = vmul.f32 %v325_v9, %v314_v13  ;;  %v335_v20 = vmul.f32 %v325_v9, %v315_v17  ;;  %v329_v22 = vmul.f32 %v325_v9, %v309_v19  ;;  %v310_v23 = vld [vmem:[%s2541_s18 + $0x20] sm:$0xff]  ;;  %v311_v24 = vld [vmem:[%s2541_s18 + $0x28] sm:$0xff]  ;;  %v316_v25 = vld [vmem:[%s2541_s18 + $0x50] sm:$0xff] }
  0x1d   : > { %v2555_v26 = vadd.f32 %v2543_v10, %v326_v14  ;;  %v2558_v27 = vadd.f32 %v2543_v10, %v327_v15  ;;  %v330_v29 = vmul.f32 %v325_v9, %v310_v23  ;;  %v317_v30 = vld [vmem:[%s2541_s18 + $0x58] sm:$0xff]  ;;  %v312_v31 = vld [vmem:[%s2541_s18 + $0x30] sm:$0xff]  ;;  %v2569_v33 = vadd.f32 %v2543_v10, %v328_v21  ;;  %v318_v34 = vld [vmem:[%s2541_s18 + $0x60] sm:$0xff] }
  0x1e   : > { %v2561_v28 = vadd.f32 %v2543_v10, %v334_v16  ;;  %v2566_v32 = vadd.f32 %v2543_v10, %v335_v20  ;;  %v319_v35 = vld [vmem:[%s2541_s18 + $0x68] sm:$0xff]  ;;  %v331_v36 = vmul.f32 %v325_v9, %v311_v24  ;;  %v336_v37 = vmul.f32 %v325_v9, %v316_v25  ;;  %v320_v39 = vld [vmem:[%s2541_s18 + $0x70] sm:$0xff]  ;;  %v313_v45 = vld [vmem:[%s2541_s18 + $0x38] sm:$0xff] }
  0x1f   : > { %2066 = vmatprep.mubr.msk.f32.mxu0 %vm373_vm0, %v2555_v26  ;;  %v337_v38 = vmul.f32 %v325_v9, %v317_v30  ;;  %v2583_v40 = vadd.f32 %v2543_v10, %v329_v22  ;;  %v2586_v41 = vadd.f32 %v2543_v10, %v330_v29  ;;  %v332_v42 = vmul.f32 %v325_v9, %v312_v31  ;;  %v321_v48 = vld [vmem:[%s2541_s18 + $0x78] sm:$0xff]  ;;  %v866_v31 = vld [vmem:[%s3201_s4 + $0x50] sm:$0xff]  ;;  %s298_s18 = scalar_lea.vmem [#allocation2], %s297_s17 }
  0x20   : > { %2078 = vmatprep.mubr.msk.f32.mxu1 %vm373_vm0, %v2561_v28  ;;  %2067 = vmatmul.mubr.msk.f32.vlgmr.msra.gmra.mxu0 %vm373_vm0, %v2558_v27  ;;  %v2591_v43 = vadd.f32 %v2543_v10, %v336_v37  ;;  %v338_v46 = vmul.f32 %v325_v9, %v318_v34  ;;  %v339_v47 = vmul.f32 %v325_v9, %v319_v35  ;;  %v867_v30 = vld [vmem:[%s3201_s4 + $0x58] sm:$0xff]  ;;  %v864_v37 = vld [vmem:[%s3201_s4 + $0x40] sm:$0xff]  ;;  %s1840_s19 = sshll.u32 %s298_s18, 4  ;;  %s1841_s19 = int_to_ptr.vmem [resolvable:$true] %s1840_s19 }
  0x21   : > { %2079 = vmatmul.mubr.msk.f32.vlgmr.msra.gmra.mxu1 %vm373_vm0, %v2566_v32  ;;  %2069 = vmatprep.mubr.msk.f32.mxu0 %vm373_vm0, %v2569_v33  ;;  %v2594_v44 = vadd.f32 %v2543_v10, %v337_v38  ;;  %v340_v49 = vmul.f32 %v325_v9, %v320_v39  ;;  %v2599_v50 = vadd.f32 %v2543_v10, %v331_v36  ;;  %v865_v36 = vld [vmem:[%s3201_s4 + $0x48] sm:$0xff]  ;;  %v863_v39 = vld [vmem:[%s3201_s4 + $0x38] sm:$0xff]  ;;  %s2358_s26 = scalar_lea.vmem %s1841_s19, 16  ;;  %p2365_p0 = scmp.lt.s32.totalorder %s1841_s19, %s2363_s10 }
  0x22   : > { %2081 = vmatprep.mubr.msk.f32.mxu1 %vm373_vm0, %v2591_v43  ;;  %v2604_v51 = vadd.f32 %v2543_v10, %v338_v46  ;;  %v333_v52 = vmul.f32 %v325_v9, %v313_v45  ;;  %v2611_v53 = vadd.f32 %v2543_v10, %v339_v47  ;;  %v341_v54 = vmul.f32 %v325_v9, %v321_v48  ;;  %v861_v45 = vld [vmem:[%s3201_s4 + $0x28] sm:$0xff]  ;;  %v860_v46 = vld [vmem:[%s3201_s4 + $0x20] sm:$0xff]  ;;  %v859_v47 = vld [vmem:[%s3201_s4 + $0x18] sm:$0xff]  ;;  %p2359_p11 = scmp.ne.s32.totalorder %s1841_s19, %s2358_s26 }
  0x23   : > { %v2616_v55 = vadd.f32 %v2543_v10, %v332_v42  ;;  %v2621_v56 = vadd.f32 %v2543_v10, %v340_v49  ;;  %2090 = vmatprep.subr.mxu1 %v867_v30  ;;  %v862_v42 = vld [vmem:[%s3201_s4 + $0x30] sm:$0xff]  ;;  %v857_v49 = vld [vmem:[%s3201_s4 + $0x8] sm:$0xff] }
  0x24   : > { %2070 = vmatmul.mubr.msk.f32.gmra.mxu0 %vm373_vm0, %v2583_v40  ;;  %v2626_v57 = vadd.f32 %v2543_v10, %v333_v52  ;;  %v2631_v58 = vadd.f32 %v2543_v10, %v341_v54  ;;  %2091 = vmatpush3.msra.mxu1 %v867_v30  ;;  %v858_v48 = vld [vmem:[%s3201_s4 + $0x10] sm:$0xff]  ;;  %v856_v52 = vld [vmem:[%s3201_s4] sm:$0xff]  ;;  %p2360_p12 = pnand %p2359_p11, %p2504_p5 }
  0x25   : > { %2082 = vmatmul.mubr.msk.f32.gmra.mxu1 %vm373_vm0, %v2594_v44  ;;  %2072 = vmatprep.mubr.msk.f32.mxu0 %vm373_vm0, %v2586_v41 }
  0x26   : > { %2084 = vmatprep.mubr.msk.f32.mxu1 %vm373_vm0, %v2604_v51  ;;  %3216 = vst [vmem:[#allocation6_spill] sm:$0xff] %v2631_v58  ;;  %2092 = vmatprep.subr.mxu1 %v866_v31  ;;  %p2361_p13 = pneg %p2360_p12 }
  0x27   : > { %2093 = vmatpush3.msra.mxu1 %v866_v31 }
  0x28   : > { %2073 = vmatmul.mubr.msk.f32.gmra.mxu0 %vm373_vm0, %v2599_v50  ;;  %2094 = vmatprep.subr.mxu1 %v865_v36 }
  0x29   : > { %2085 = vmatmul.mubr.msk.f32.gmra.mxu1 %vm373_vm0, %v2611_v53  ;;  %2075 = vmatprep.mubr.msk.f32.mxu0 %vm373_vm0, %v2616_v55 }
  0x2a   : > { %2087 = vmatprep.mubr.msk.f32.mxu1 %vm373_vm0, %v2621_v56  ;;  %2095 = vmatpush3.msra.mxu1 %v865_v36 }
  0x2b   : > { %2096 = vmatprep.subr.mxu1 %v864_v37 }
  0x2c   : > { %2076 = vmatmul.mubr.msk.f32.gmra.mxu0 %vm373_vm0, %v2626_v57  ;;  %2097 = vmatpush3.msra.mxu1 %v864_v37 }
  0x2d   : > { %2088 = vmatmul.mubr.msk.f32.gmra.mxu1 %vm373_vm0, %v2631_v58  ;;  %2098 = vmatprep.subr.mxu1 %v863_v39 }
  0x2e   : > { %2099 = vmatpush3.msra.mxu1 %v863_v39 }
  0x2f   : > { %2100 = vmatprep.subr.mxu1 %v862_v42 }
  0x30   : > { %2101 = vmatpush3.msra.mxu1 %v862_v42 }
  0x31   : > { %2102 = vmatprep.subr.mxu1 %v861_v45 }
  0x32   : > { %2103 = vmatpush3.msra.mxu1 %v861_v45 }
  0x33   : > { %2104 = vmatprep.subr.mxu1 %v860_v46 }
  0x34   : > { %2105 = vmatpush3.msra.mxu1 %v860_v46 }
  0x35   : > { %2106 = vmatprep.subr.mxu1 %v859_v47 }
  0x36   : > { %2107 = vmatpush3.msra.mxu1 %v859_v47 }
  0x37   : > { %2108 = vmatprep.subr.mxu1 %v858_v48 }
  0x38   : > { %2109 = vmatpush3.msra.mxu1 %v858_v48 }
  0x39   : > { %2110 = vmatprep.subr.mxu1 %v857_v49 }
  0x3a   : > { %2111 = vmatpush3.msra.mxu1 %v857_v49 }
  0x3b   : > { %2112 = vmatprep.subr.mxu1 %v856_v52 }
  0x3c   : > { %2113 = vmatpush3.msra.mxu1 %v856_v52 }
  0xe0   : > { %v2068_v59 = vpop.f32.mrf.mxu0 }
  0xe1   : > { %v2080_v0 = vpop.f32.mrf.mxu1  ;;  %v2648_v3 = vadd.f32 %v2068_v59, %v1901_v60 }
  0xe2   : > { %v488_v61 = vpop.f32.mrf.mxu0  ;;  %v2680_v21 = vadd.f32 %v2080_v0, %v1901_v60 }
  0xe3   : > { %v2644_v62 = vadd.f32 %v1901_v60, %v488_v61  ;;  %v528_v7 = vpop.f32.mrf.mxu1 }
  0xe4   : > { %v2071_v63 = vpop.f32.mrf.mxu0  ;;  %v2672_v18 = vadd.f32 %v1901_v60, %v528_v7 }
  0xe5   : > { %695 = vrot.lane.b32.xlu0 %v2644_v62, %s2420_s22  ;;  %v2656_v9 = vadd.f32 %v2071_v63, %v1901_v60  ;;  %v2083_v11 = vpop.f32.mrf.mxu1 }
  0xe6   : > { %v498_v1 = vpop.f32.mrf.mxu0  ;;  %v2688_v24 = vadd.f32 %v2083_v11, %v1901_v60 }
  0xe7   : > { %v2650_v5 = vadd.f32 %v1901_v60, %v498_v1  ;;  %v538_v16 = vpop.f32.mrf.mxu1 }
  0xe8   : > { %v2074_v6 = vpop.f32.mrf.mxu0  ;;  %v2682_v22 = vadd.f32 %v1901_v60, %v538_v16 }
  0xe9   : > { %699 = vrot.lane.b32.xlu1 %v2650_v5, %s2420_s22  ;;  %697 = vrot.lane.b32.xlu0 %v2648_v3, %s2420_s22  ;;  %v2664_v14 = vadd.f32 %v2074_v6, %v1901_v60  ;;  %v2086_v17 = vpop.f32.mrf.mxu1 }
  0xea   : > { %v508_v8 = vpop.f32.mrf.mxu0  ;;  %v2702_v34 = vadd.f32 %v2086_v17, %v1901_v60 }
  0xeb   : > { %v2658_v10 = vadd.f32 %v1901_v60, %v508_v8  ;;  %v548_v20 = vpop.f32.mrf.mxu1 }
  0xec   : > { %v2077_v12 = vpop.f32.mrf.mxu0  ;;  %v2690_v25 = vadd.f32 %v1901_v60, %v548_v20 }
  0xed   : > { %701 = vrot.lane.b32.xlu1 %v2656_v9, %s2420_s22  ;;  %703 = vrot.lane.b32.xlu0 %v2658_v10, %s2420_s22  ;;  %v2674_v19 = vadd.f32 %v2077_v12, %v1901_v60  ;;  %v2089_v23 = vpop.f32.mrf.mxu1 }
  0xee   : > { %v518_v13 = vpop.f32.mrf.mxu0  ;;  %v2716_v38 = vadd.f32 %v2089_v23, %v1901_v60 }
  0xef   : > { %v2666_v15 = vadd.f32 %v1901_v60, %v518_v13  ;;  %v558_v29 = vpop.f32.mrf.mxu1 }
  0xf0   : > { %v2704_v35 = vadd.f32 %v1901_v60, %v558_v29 }
  0xf1   : > { %705 = vrot.lane.b32.xlu1 %v2664_v14, %s2420_s22  ;;  %707 = vrot.lane.b32.xlu0 %v2666_v15, %s2420_s22 }
  0xf2   : > { %v1932_v2 = vmul.f32 -1.442695, %v2704_v35 }
  0xf5   : > { %709 = vrot.lane.b32.xlu1 %v2674_v19, %s2420_s22  ;;  %711 = vrot.lane.b32.xlu0 %v2672_v18, %s2420_s22 }
  0xf9   : > { %713 = vrot.lane.b32.xlu1 %v2680_v21, %s2420_s22  ;;  %715 = vrot.lane.b32.xlu0 %v2682_v22, %s2420_s22 }
  0xfd   : > { %717 = vrot.lane.b32.xlu1 %v2688_v24, %s2420_s22  ;;  %719 = vrot.lane.b32.xlu0 %v2690_v25, %s2420_s22 }
 0x101   : > { %721 = vrot.lane.b32.xlu1 %v2702_v34, %s2420_s22  ;;  %723 = vrot.lane.b32.xlu0 %v2704_v35, %s2420_s22 }
 0x105   : > { %725 = vrot.lane.b32.xlu1 %v2716_v38, %s2420_s22 }
 0x157   : > { %v696_v54 = vpop.permute.xlu0 %695 }
 0x158   : > { %v743_v59 = vmul.f32 %v696_v54, %v2555_v26 }
 0x15a   : > { %v2746_v60 = vadd.f32 %v743_v59, %v2555_v26 }
 0x15b   : > { %v700_v61 = vpop.permute.xlu1 %699  ;;  %v698_v63 = vpop.permute.xlu0 %697 }
 0x15c   : > { %v745_v0 = vmul.f32 %v700_v61, %v2569_v33  ;;  %v744_v1 = vmul.f32 %v698_v63, %v2558_v27  ;;  %791 = vrot.lane.b32.xlu0 %v2746_v60, %s2420_s22 }
 0x15e   : > { %v2753_v6 = vadd.f32 %v745_v0, %v2569_v33  ;;  %v2756_v7 = vadd.f32 %v744_v1, %v2558_v27 }
 0x15f   : > { %v702_v8 = vpop.permute.xlu1 %701  ;;  %v704_v11 = vpop.permute.xlu0 %703 }
 0x160   : > { %v746_v12 = vmul.f32 %v702_v8, %v2583_v40  ;;  %v747_v13 = vmul.f32 %v704_v11, %v2586_v41  ;;  %795 = vrot.lane.b32.xlu0 %v2753_v6, %s2420_s22  ;;  %793 = vrot.lane.b32.xlu1 %v2756_v7, %s2420_s22 }
 0x162   : > { %v2765_v16 = vadd.f32 %v746_v12, %v2583_v40  ;;  %v2768_v17 = vadd.f32 %v747_v13, %v2586_v41 }
 0x163   : > { %v706_v20 = vpop.permute.xlu1 %705  ;;  %v708_v23 = vpop.permute.xlu0 %707 }
 0x164   : > { %v748_v29 = vmul.f32 %v706_v20, %v2599_v50  ;;  %v749_v30 = vmul.f32 %v708_v23, %v2616_v55  ;;  %797 = vrot.lane.b32.xlu1 %v2765_v16, %s2420_s22  ;;  %799 = vrot.lane.b32.xlu0 %v2768_v17, %s2420_s22 }
 0x166   : > { %v2777_v31 = vadd.f32 %v748_v29, %v2599_v50  ;;  %v2780_v36 = vadd.f32 %v749_v30, %v2616_v55 }
 0x167   : > { %v710_v37 = vpop.permute.xlu1 %709  ;;  %v712_v39 = vpop.permute.xlu0 %711 }
 0x168   : > { %v750_v42 = vmul.f32 %v710_v37, %v2626_v57  ;;  %v751_v45 = vmul.f32 %v712_v39, %v2561_v28  ;;  %801 = vrot.lane.b32.xlu1 %v2777_v31, %s2420_s22  ;;  %803 = vrot.lane.b32.xlu0 %v2780_v36, %s2420_s22 }
 0x16a   : > { %v2789_v46 = vadd.f32 %v750_v42, %v2626_v57  ;;  %v2792_v47 = vadd.f32 %v751_v45, %v2561_v28 }
 0x16b   : > { %v714_v48 = vpop.permute.xlu1 %713  ;;  %v716_v49 = vpop.permute.xlu0 %715 }
 0x16c   : > { %v752_v52 = vmul.f32 %v714_v48, %v2566_v32  ;;  %v753_v54 = vmul.f32 %v716_v49, %v2591_v43  ;;  %805 = vrot.lane.b32.xlu1 %v2789_v46, %s2420_s22  ;;  %807 = vrot.lane.b32.xlu0 %v2792_v47, %s2420_s22  ;;  %v1918_v48 = vmul.f32 -1.442695, %v2644_v62  ;;  %v1919_v49 = vmul.f32 -1.442695, %v2648_v3 }
 0x16e   : > { %v2801_v59 = vadd.f32 %v752_v52, %v2566_v32  ;;  %v2804_v61 = vadd.f32 %v753_v54, %v2591_v43  ;;  %2228 = vpow2.f32 %v1918_v48  ;;  %v1920_v52 = vmul.f32 -1.442695, %v2650_v5 }
 0x16f   : > { %v718_v63 = vpop.permute.xlu1 %717  ;;  %v720_v0 = vpop.permute.xlu0 %719  ;;  %2230 = vpow2.f32 %v1919_v49  ;;  %v1921_v54 = vmul.f32 -1.442695, %v2656_v9  ;;  %v1929_v49 = vmul.f32 -1.442695, %v2688_v24 }
 0x170   : > { %v754_v1 = vmul.f32 %v718_v63, %v2594_v44  ;;  %v755_v8 = vmul.f32 %v720_v0, %v2604_v51  ;;  %809 = vrot.lane.b32.xlu1 %v2801_v59, %s2420_s22  ;;  %811 = vrot.lane.b32.xlu0 %v2804_v61, %s2420_s22  ;;  %2232 = vpow2.f32 %v1920_v52  ;;  %v1922_v63 = vmul.f32 -1.442695, %v2658_v10 }
 0x171   : > { %2234 = vpow2.f32 %v1921_v54  ;;  %v1923_v0 = vmul.f32 -1.442695, %v2664_v14  ;;  %v1930_v52 = vmul.f32 -1.442695, %v2690_v25 }
 0x172   : > { %v2813_v11 = vadd.f32 %v754_v1, %v2594_v44  ;;  %v2816_v12 = vadd.f32 %v755_v8, %v2604_v51  ;;  %2236 = vpow2.f32 %v1922_v63  ;;  %v1924_v1 = vmul.f32 -1.442695, %v2666_v15 }
 0x173   : > { %v722_v13 = vpop.permute.xlu1 %721  ;;  %v724_v20 = vpop.permute.xlu0 %723  ;;  %v1926_v8 = vmul.f32 -1.442695, %v2672_v18  ;;  %2238 = vpow2.f32 %v1923_v0 }
 0x174   : > { %v756_v23 = vmul.f32 %v722_v13, %v2611_v53  ;;  %v757_v29 = vmul.f32 %v724_v20, %v2621_v56  ;;  %813 = vrot.lane.b32.xlu1 %v2813_v11, %s2420_s22  ;;  %815 = vrot.lane.b32.xlu0 %v2816_v12, %s2420_s22  ;;  %v1925_v13 = vmul.f32 -1.442695, %v2674_v19  ;;  %2240 = vpow2.f32 %v1924_v1 }
 0x175   : > { %2242 = vpow2.f32 %v1926_v8  ;;  %v1931_v8 = vmul.f32 -1.442695, %v2702_v34 }
 0x176   : > { %v2825_v30 = vadd.f32 %v756_v23, %v2611_v53  ;;  %v2828_v37 = vadd.f32 %v757_v29, %v2621_v56  ;;  %v1927_v23 = vmul.f32 -1.442695, %v2680_v21  ;;  %v1928_v29 = vmul.f32 -1.442695, %v2682_v22 }
 0x177   : > { %v726_v39 = vpop.permute.xlu1 %725  ;;  %2244 = vpow2.f32 %v1925_v13 }
 0x178   : > { %3217 = vst [vmem:[#allocation7_spill] sm:$0xff] %v2825_v30  ;;  %3218 = vst [vmem:[#allocation8_spill] sm:$0xff] %v2828_v37  ;;  %v758_v42 = vmul.f32 %v726_v39, %v2631_v58  ;;  %817 = vrot.lane.b32.xlu1 %v2825_v30, %s2420_s22  ;;  %819 = vrot.lane.b32.xlu0 %v2828_v37, %s2420_s22  ;;  %2246 = vpow2.f32 %v1927_v23 }
 0x179   : > { %2248 = vpow2.f32 %v1928_v29 }
 0x17a   : > { %v2836_v45 = vadd.f32 %v758_v42, %v2631_v58 }
 0x17b   : > { %v2229_v20 = vpop.eup %2228 }
 0x17c   : > { %3219 = vst [vmem:[#allocation9_spill] sm:$0xff] %v2836_v45  ;;  %821 = vrot.lane.b32.xlu1 %v2836_v45, %s2420_s22  ;;  %v2231_v39 = vpop.eup %2230  ;;  %v615_v42 = vadd.f32 1.0, %v2229_v20 }
 0x17d   : > { %v2233_v48 = vpop.eup %2232  ;;  %v616_v54 = vadd.f32 1.0, %v2231_v39  ;;  %v1933_v39 = vmul.f32 -1.442695, %v2716_v38 }
 0x17e   : > { %v2235_v63 = vpop.eup %2234  ;;  %2250 = vrcp.f32 %v615_v42  ;;  %v617_v0 = vadd.f32 1.0, %v2233_v48 }
 0x17f   : > { %v2237_v1 = vpop.eup %2236  ;;  %2252 = vpow2.f32 %v1929_v49  ;;  %v618_v13 = vadd.f32 1.0, %v2235_v63 }
 0x180   : > { %2254 = vpow2.f32 %v1930_v52  ;;  %v2239_v20 = vpop.eup %2238  ;;  %v619_v4 = vadd.f32 1.0, %v2237_v1 }
 0x181   : > { %2256 = vrcp.f32 %v616_v54  ;;  %v2241_v23 = vpop.eup %2240  ;;  %v620_v29 = vadd.f32 1.0, %v2239_v20 }
 0x182   : > { %2258 = vrcp.f32 %v617_v0  ;;  %v2243_v42 = vpop.eup %2242  ;;  %v621_v48 = vadd.f32 1.0, %v2241_v23 }
 0x183   : > { %2260 = vpow2.f32 %v1931_v8  ;;  %v623_v45 = vadd.f32 1.0, %v2243_v42 }
 0x184   : > { %2262 = vpow2.f32 %v1932_v2  ;;  %v2245_v49 = vpop.eup %2244 }
 0x185   : > { %2264 = vrcp.f32 %v618_v13  ;;  %v2247_v52 = vpop.eup %2246  ;;  %v622_v63 = vadd.f32 1.0, %v2245_v49 }
 0x186   : > { %2266 = vrcp.f32 %v619_v4  ;;  %v2249_v54 = vpop.eup %2248  ;;  %v624_v8 = vadd.f32 1.0, %v2247_v52 }
 0x187   : > { %2268 = vpow2.f32 %v1933_v39  ;;  %v625_v20 = vadd.f32 1.0, %v2249_v54 }
 0x188   : > { %2270 = vrcp.f32 %v620_v29 }
 0x189   : > { %2272 = vrcp.f32 %v621_v48 }
 0x18a   : > { %2274 = vrcp.f32 %v623_v45 }
 0x18b   : > { %v2251_v0 = vpop.eup %2250  ;;  %2276 = vrcp.f32 %v622_v63 }
 0x18c   : > { %v2253_v1 = vpop.eup %2252  ;;  %v663_v13 = vmul.f32 %v2251_v0, %v2644_v62  ;;  %2278 = vrcp.f32 %v624_v8 }
 0x18d   : > { %v2255_v37 = vpop.eup %2254  ;;  %v626_v48 = vadd.f32 1.0, %v2253_v1  ;;  %2280 = vrcp.f32 %v625_v20 }
 0x18e   : > { %v2257_v2 = vpop.eup %2256  ;;  %v627_v62 = vadd.f32 1.0, %v2255_v37 }
 0x18f   : > { %v2259_v4 = vpop.eup %2258  ;;  %v664_v45 = vmul.f32 %v2257_v2, %v2648_v3  ;;  %2282 = vrcp.f32 %v626_v48 }
 0x190   : > { %v2261_v39 = vpop.eup %2260  ;;  %v665_v52 = vmul.f32 %v2259_v4, %v2650_v5  ;;  %2284 = vrcp.f32 %v627_v62 }
 0x191   : > { %v2263_v42 = vpop.eup %2262  ;;  %v628_v8 = vadd.f32 1.0, %v2261_v39 }
 0x192   : > { %v2265_v49 = vpop.eup %2264  ;;  %v629_v5 = vadd.f32 1.0, %v2263_v42 }
 0x193   : > { %v2267_v54 = vpop.eup %2266  ;;  %2286 = vrcp.f32 %v628_v8 }
 0x194   : > { %v667_v3 = vmul.f32 %v2267_v54, %v2658_v10  ;;  %2288 = vrcp.f32 %v629_v5 }
 0x1ce   : > { %v792_v23 = vpop.permute.xlu0 %791 }
 0x1cf   : > { %v840_v29 = vsel %vm839_vm1, %v663_v13, %v792_v23  ;;  %v2269_v13 = vpop.eup %2268  ;;  %v666_v23 = vmul.f32 %v2265_v49, %v2656_v9 }
 0x1d0   : > { %2114 = vmatprep.mubr.msk.f32.mxu1 %vm875_vm2, %v840_v29  ;;  %v2271_v1 = vpop.eup %2270  ;;  %v630_v10 = vadd.f32 1.0, %v2269_v13 }
 0x1d1   : > { %v2273_v37 = vpop.eup %2272  ;;  %v668_v39 = vmul.f32 %v2271_v1, %v2664_v14 }
 0x1d2   : > { %v794_v63 = vpop.permute.xlu1 %793  ;;  %v796_v0 = vpop.permute.xlu0 %795  ;;  %v669_v9 = vmul.f32 %v2273_v37, %v2666_v15  ;;  %2290 = vrcp.f32 %v630_v10 }
 0x1d3   : > { %v841_v58 = vsel %vm839_vm1, %v664_v45, %v794_v63  ;;  %v842_v30 = vsel %vm839_vm1, %v665_v52, %v796_v0 }
 0x1d4   : > { %2115 = vmatmul.mubr.msk.f32.vlgmr.msra.gmra.mxu1 %vm875_vm2, %v841_v58  ;;  %v2275_v58 = vpop.eup %2274 }
 0x1d5   : > { %2117 = vmatprep.mubr.msk.f32.mxu1 %vm875_vm2, %v842_v30  ;;  %v2277_v30 = vpop.eup %2276  ;;  %v671_v62 = vmul.f32 %v2275_v58, %v2672_v18 }
 0x1d6   : > { %v798_v2 = vpop.permute.xlu1 %797  ;;  %v800_v20 = vpop.permute.xlu0 %799  ;;  %v670_v14 = vmul.f32 %v2277_v30, %v2674_v19 }
 0x1d7   : > { %v843_v4 = vsel %vm839_vm1, %v666_v23, %v798_v2  ;;  %v844_v29 = vsel %vm839_vm1, %v667_v3, %v800_v20  ;;  %v2279_v52 = vpop.eup %2278 }
 0x1d8   : > { %2118 = vmatmul.mubr.msk.f32.gmra.mxu1 %vm875_vm2, %v843_v4  ;;  %v2281_v15 = vpop.eup %2280  ;;  %v672_v1 = vmul.f32 %v2279_v52, %v2680_v21 }
 0x1d9   : > { %2120 = vmatprep.mubr.msk.f32.mxu1 %vm875_vm2, %v844_v29  ;;  %v2283_v8 = vpop.eup %2282  ;;  %v673_v23 = vmul.f32 %v2281_v15, %v2682_v22 }
 0x1da   : > { %v802_v42 = vpop.permute.xlu1 %801  ;;  %v804_v48 = vpop.permute.xlu0 %803  ;;  %v674_v20 = vmul.f32 %v2283_v8, %v2688_v24 }
 0x1db   : > { %v845_v49 = vsel %vm839_vm1, %v668_v39, %v802_v42  ;;  %v846_v45 = vsel %vm839_vm1, %v669_v9, %v804_v48  ;;  %v2285_v18 = vpop.eup %2284 }
 0x1dc   : > { %2121 = vmatmul.mubr.msk.f32.gmra.mxu1 %vm875_vm2, %v845_v49  ;;  %v2287_v2 = vpop.eup %2286  ;;  %v675_v4 = vmul.f32 %v2285_v18, %v2690_v25 }
 0x1dd   : > { %2123 = vmatprep.mubr.msk.f32.mxu1 %vm875_vm2, %v846_v45  ;;  %v2289_v21 = vpop.eup %2288  ;;  %v676_v9 = vmul.f32 %v2287_v2, %v2702_v34 }
 0x1de   : > { %v806_v54 = vpop.permute.xlu1 %805  ;;  %v808_v63 = vpop.permute.xlu0 %807  ;;  %v677_v10 = vmul.f32 %v2289_v21, %v2704_v35  ;;  %v2907_v35 = vld [vmem:[%s3202_s5] ss:$0 sm:$0xff]  ;;  %v1364_v21 = vld [vmem:[%s3203_s6 + $0x38] sm:$0xff] }
 0x1df   : > { %v847_v0 = vsel %vm839_vm1, %v670_v14, %v806_v54  ;;  %v848_v13 = vsel %vm839_vm1, %v671_v62, %v808_v63  ;;  %v2291_v24 = vpop.eup %2290  ;;  %2138 = vmatprep.subr.mxu0 %v1364_v21 }
 0x1e0   : > { %2124 = vmatmul.mubr.msk.f32.gmra.mxu1 %vm875_vm2, %v847_v0  ;;  %v678_v49 = vmul.f32 %v2291_v24, %v2716_v38  ;;  %2139 = vmatpush3.msra.mxu0 %v1364_v21 }
 0x1e1   : > { %2126 = vmatprep.mubr.msk.f32.mxu1 %vm875_vm2, %v848_v13 }
 0x1e2   : > { %v810_v19 = vpop.permute.xlu1 %809  ;;  %v812_v3 = vpop.permute.xlu0 %811 }
 0x1e3   : > { %v849_v5 = vsel %vm839_vm1, %v672_v1, %v810_v19  ;;  %v850_v37 = vsel %vm839_vm1, %v673_v23, %v812_v3 }
 0x1e4   : > { %2127 = vmatmul.mubr.msk.f32.gmra.mxu1 %vm875_vm2, %v849_v5 }
 0x1e5   : > { %2129 = vmatprep.mubr.msk.f32.mxu1 %vm875_vm2, %v850_v37 }
 0x1e6   : > { %v814_v22 = vpop.permute.xlu1 %813  ;;  %v816_v29 = vpop.permute.xlu0 %815 }
 0x1e7   : > { %v851_v58 = vsel %vm839_vm1, %v674_v20, %v814_v22  ;;  %v852_v39 = vsel %vm839_vm1, %v675_v4, %v816_v29 }
 0x1e8   : > { %2130 = vmatmul.mubr.msk.f32.gmra.mxu1 %vm875_vm2, %v851_v58  ;;  %v1363_v58 = vld [vmem:[%s3203_s6 + $0x30] sm:$0xff] }
 0x1e9   : > { %2132 = vmatprep.mubr.msk.f32.mxu1 %vm875_vm2, %v852_v39  ;;  %2140 = vmatprep.subr.mxu0 %v1363_v58 }
 0x1ea   : > { %v818_v30 = vpop.permute.xlu1 %817  ;;  %v820_v25 = vpop.permute.xlu0 %819  ;;  %2141 = vmatpush3.msra.mxu0 %v1363_v58 }
 0x1eb   : > { %v853_v42 = vsel %vm839_vm1, %v676_v9, %v818_v30  ;;  %v854_v48 = vsel %vm839_vm1, %v677_v10, %v820_v25  ;;  %v1362_v30 = vld [vmem:[%s3203_s6 + $0x28] sm:$0xff] }
 0x1ec   : > { %2133 = vmatmul.mubr.msk.f32.gmra.mxu1 %vm875_vm2, %v853_v42  ;;  %2142 = vmatprep.subr.mxu0 %v1362_v30 }
 0x1ed   : > { %2135 = vmatprep.mubr.msk.f32.mxu1 %vm875_vm2, %v854_v48  ;;  %2143 = vmatpush3.msra.mxu0 %v1362_v30 }
 0x1ee   : > { %v822_v45 = vpop.permute.xlu1 %821 }
 0x1ef   : > { %v855_v34 = vsel %vm839_vm1, %v678_v49, %v822_v45  ;;  %v1361_v49 = vld [vmem:[%s3203_s6 + $0x20] sm:$0xff] }
 0x1f0   : > { %2136 = vmatmul.mubr.msk.f32.gmra.mxu1 %vm875_vm2, %v855_v34  ;;  %2144 = vmatprep.subr.mxu0 %v1361_v49 }
 0x1f1   : > { %2145 = vmatpush3.msra.mxu0 %v1361_v49 }
 0x294   : > { %v2116_v52 = vpop.f32.mrf.mxu1 }
 0x295   : > { %v2910_v62 = vadd.f32 %v2116_v52, %v2907_v35 }
 0x296   : > { %v990_v14 = vpop.f32.mrf.mxu1 }
 0x297   : > { %v1952_v15 = vmul.f32 -1.442695, %v2910_v62  ;;  %v2914_v38 = vadd.f32 %v2907_v35, %v990_v14  ;;  %1199 = vrot.lane.b32.xlu1 %v2910_v62, %s2421_s24 }
 0x298   : > { %v2119_v54 = vpop.f32.mrf.mxu1 }
 0x299   : > { %2292 = vpow2.f32 %v1952_v15  ;;  %v1951_v63 = vmul.f32 -1.442695, %v2914_v38  ;;  %v2920_v0 = vadd.f32 %v2119_v54, %v2907_v35  ;;  %1197 = vrot.lane.b32.xlu0 %v2914_v38, %s2421_s24  ;;  %v1360_v54 = vld [vmem:[%s3203_s6 + $0x18] sm:$0xff] }
 0x29a   : > { %v1000_v13 = vpop.f32.mrf.mxu1  ;;  %2146 = vmatprep.subr.mxu0 %v1360_v54 }
 0x29b   : > { %2294 = vpow2.f32 %v1951_v63  ;;  %v1954_v8 = vmul.f32 -1.442695, %v2920_v0  ;;  %v2926_v1 = vadd.f32 %v2907_v35, %v1000_v13  ;;  %2147 = vmatpush3.msra.mxu0 %v1360_v54 }
 0x29c   : > { %v2122_v23 = vpop.f32.mrf.mxu1 }
 0x29d   : > { %2296 = vpow2.f32 %v1954_v8  ;;  %v1953_v18 = vmul.f32 -1.442695, %v2926_v1  ;;  %v2930_v19 = vadd.f32 %v2122_v23, %v2907_v35  ;;  %1203 = vrot.lane.b32.xlu0 %v2920_v0, %s2421_s24  ;;  %v1359_v23 = vld [vmem:[%s3203_s6 + $0x10] sm:$0xff] }
 0x29e   : > { %v1010_v3 = vpop.f32.mrf.mxu1  ;;  %2148 = vmatprep.subr.mxu0 %v1359_v23 }
 0x29f   : > { %2298 = vpow2.f32 %v1953_v18  ;;  %v1956_v5 = vmul.f32 -1.442695, %v2930_v19  ;;  %v2936_v37 = vadd.f32 %v2907_v35, %v1010_v3  ;;  %2149 = vmatpush3.msra.mxu0 %v1359_v23 }
 0x2a0   : > { %v2125_v2 = vpop.f32.mrf.mxu1 }
 0x2a1   : > { %1201 = vrot.lane.b32.xlu0 %v2926_v1, %s2421_s24  ;;  %v2941_v20 = vadd.f32 %v2125_v2, %v2907_v35  ;;  %2300 = vpow2.f32 %v1956_v5  ;;  %v1955_v22 = vmul.f32 -1.442695, %v2936_v37  ;;  %v1358_v2 = vld [vmem:[%s3203_s6 + $0x8] sm:$0xff] }
 0x2a2   : > { %v1020_v4 = vpop.f32.mrf.mxu1  ;;  %2150 = vmatprep.subr.mxu0 %v1358_v2 }
 0x2a3   : > { %v1958_v9 = vmul.f32 -1.442695, %v2941_v20  ;;  %v2954_v10 = vadd.f32 %v2907_v35, %v1020_v4  ;;  %2302 = vpow2.f32 %v1955_v22  ;;  %2151 = vmatpush3.msra.mxu0 %v1358_v2 }
 0x2a4   : > { %v2128_v29 = vpop.f32.mrf.mxu1 }
 0x2a5   : > { %1207 = vrot.lane.b32.xlu0 %v2930_v19, %s2421_s24  ;;  %v1957_v52 = vmul.f32 -1.442695, %v2954_v10  ;;  %v2966_v14 = vadd.f32 %v2128_v29, %v2907_v35  ;;  %v1357_v29 = vld [vmem:[%s3203_s6] sm:$0xff] }
 0x2a6   : > { %v2293_v39 = vpop.eup %2292  ;;  %v1030_v24 = vpop.f32.mrf.mxu1  ;;  %2152 = vmatprep.subr.mxu0 %v1357_v29 }
 0x2a7   : > { %v1118_v25 = vadd.f32 1.0, %v2293_v39  ;;  %v1960_v18 = vmul.f32 -1.442695, %v2966_v14  ;;  %v2978_v3 = vadd.f32 %v2907_v35, %v1030_v24  ;;  %2153 = vmatpush3.msra.mxu0 %v1357_v29 }
 0x2a8   : > { %v2295_v42 = vpop.eup %2294  ;;  %v2131_v48 = vpop.f32.mrf.mxu1 }
 0x2a9   : > { %2304 = vrcp.f32 %v1118_v25  ;;  %v1117_v45 = vadd.f32 1.0, %v2295_v42  ;;  %1205 = vrot.lane.b32.xlu0 %v2936_v37, %s2421_s24  ;;  %v1959_v58 = vmul.f32 -1.442695, %v2978_v3  ;;  %v2990_v39 = vadd.f32 %v2131_v48, %v2907_v35 }
 0x2aa   : > { %v2297_v34 = vpop.eup %2296  ;;  %2306 = vpow2.f32 %v1958_v9  ;;  %v1040_v15 = vpop.f32.mrf.mxu1 }
 0x2ab   : > { %2308 = vrcp.f32 %v1117_v45  ;;  %v1120_v63 = vadd.f32 1.0, %v2297_v34  ;;  %v1962_v45 = vmul.f32 -1.442695, %v2990_v39  ;;  %v3000_v48 = vadd.f32 %v2907_v35, %v1040_v15 }
 0x2ac   : > { %v2299_v13 = vpop.eup %2298  ;;  %v2134_v8 = vpop.f32.mrf.mxu1  ;;  %2310 = vpow2.f32 %v1957_v52 }
 0x2ad   : > { %1211 = vrot.lane.b32.xlu0 %v2941_v20, %s2421_s24  ;;  %2312 = vrcp.f32 %v1120_v63  ;;  %v1119_v4 = vadd.f32 1.0, %v2299_v13  ;;  %v1961_v13 = vmul.f32 -1.442695, %v3000_v48 }
 0x2ae   : > { %v1050_v5 = vpop.f32.mrf.mxu1  ;;  %v2301_v21 = vpop.eup %2300  ;;  %2314 = vpow2.f32 %v1960_v18 }
 0x2af   : > { %2316 = vrcp.f32 %v1119_v4  ;;  %v1122_v24 = vadd.f32 1.0, %v2301_v21  ;;  %v3008_v23 = vadd.f32 %v2907_v35, %v1050_v5  ;;  %v3015_v4 = vadd.f32 %v2134_v8, %v2907_v35 }
 0x2b0   : > { %v2137_v22 = vpop.f32.mrf.mxu1  ;;  %v2303_v25 = vpop.eup %2302  ;;  %2318 = vpow2.f32 %v1959_v58 }
 0x2b1   : > { %1209 = vrot.lane.b32.xlu0 %v2954_v10, %s2421_s24  ;;  %2320 = vrcp.f32 %v1122_v24  ;;  %v1121_v52 = vadd.f32 1.0, %v2303_v25  ;;  %v1963_v21 = vmul.f32 -1.442695, %v3008_v23  ;;  %v3024_v24 = vadd.f32 %v2137_v22, %v2907_v35 }
 0x2b2   : > { %v1060_v9 = vpop.f32.mrf.mxu1 }
 0x2b3   : > { %v2993_v30 = vadd.f32 %v2907_v35, %v1060_v9 }
 0x2b5   : > { %v1965_v42 = vmul.f32 -1.442695, %v2993_v30  ;;  %1215 = vrot.lane.b32.xlu0 %v2966_v14, %s2421_s24 }
 0x2b6   : > { %v2305_v49 = vpop.eup %2304 }
 0x2b7   : > { %v2307_v34 = vpop.eup %2306  ;;  %v1166_v54 = vmul.f32 %v2305_v49, %v2910_v62  ;;  %2322 = vpow2.f32 %v1965_v42 }
 0x2b8   : > { %v2309_v63 = vpop.eup %2308  ;;  %2324 = vpow2.f32 %v1962_v45  ;;  %v1124_v18 = vadd.f32 1.0, %v2307_v34 }
 0x2b9   : > { %1295 = vrot.lane.b32.xlu1 %v1166_v54, %s2422_s12  ;;  %1213 = vrot.lane.b32.xlu0 %v2978_v3, %s2421_s24  ;;  %v2311_v15 = vpop.eup %2310  ;;  %2326 = vrcp.f32 %v1121_v52  ;;  %v1165_v2 = vmul.f32 %v2309_v63, %v2914_v38  ;;  %v1964_v38 = vmul.f32 -1.442695, %v3015_v4 }
 0x2ba   : > { %v2313_v62 = vpop.eup %2312  ;;  %2328 = vpow2.f32 %v1961_v13  ;;  %v1123_v5 = vadd.f32 1.0, %v2311_v15 }
 0x2bb   : > { %v2315_v29 = vpop.eup %2314  ;;  %2330 = vrcp.f32 %v1124_v18  ;;  %v1168_v58 = vmul.f32 %v2313_v62, %v2920_v0  ;;  %v1966_v0 = vmul.f32 -1.442695, %v3024_v24 }
 0x2bc   : > { %v2317_v9 = vpop.eup %2316  ;;  %2332 = vpow2.f32 %v1963_v21  ;;  %v1126_v25 = vadd.f32 1.0, %v2315_v29 }
 0x2bd   : > { %1219 = vrot.lane.b32.xlu0 %v2990_v39, %s2421_s24  ;;  %1293 = vrot.lane.b32.xlu1 %v1165_v2, %s2422_s12  ;;  %v2319_v8 = vpop.eup %2318  ;;  %2334 = vrcp.f32 %v1123_v5  ;;  %v1167_v42 = vmul.f32 %v2317_v9, %v2926_v1 }
 0x2be   : > { %v2321_v49 = vpop.eup %2320  ;;  %2336 = vpow2.f32 %v1964_v38  ;;  %v1125_v35 = vadd.f32 1.0, %v2319_v8 }
 0x2bf   : > { %2338 = vrcp.f32 %v1126_v25  ;;  %v1170_v22 = vmul.f32 %v2321_v49, %v2930_v19 }
 0x2c1   : > { %1217 = vrot.lane.b32.xlu0 %v3000_v48, %s2421_s24  ;;  %1299 = vrot.lane.b32.xlu1 %v1168_v58, %s2422_s12 }
 0x2c4   : > { %v2323_v45 = vpop.eup %2322 }
 0x2c5   : > { %1223 = vrot.lane.b32.xlu0 %v3015_v4, %s2421_s24  ;;  %1297 = vrot.lane.b32.xlu1 %v1167_v42, %s2422_s12  ;;  %v1131_v34 = vadd.f32 1.0, %v2323_v45  ;;  %v2325_v52 = vpop.eup %2324 }
 0x2c6   : > { %v2327_v54 = vpop.eup %2326  ;;  %v1128_v63 = vadd.f32 1.0, %v2325_v52 }
 0x2c7   : > { %2340 = vrcp.f32 %v1131_v34  ;;  %v2329_v1 = vpop.eup %2328  ;;  %v1169_v13 = vmul.f32 %v2327_v54, %v2936_v37 }
 0x2c8   : > { %2342 = vpow2.f32 %v1966_v0  ;;  %v2331_v15 = vpop.eup %2330  ;;  %v1127_v18 = vadd.f32 1.0, %v2329_v1 }
 0x2c9   : > { %1221 = vrot.lane.b32.xlu0 %v3008_v23, %s2421_s24  ;;  %1303 = vrot.lane.b32.xlu1 %v1170_v22, %s2422_s12  ;;  %2344 = vrcp.f32 %v1125_v35  ;;  %v2333_v19 = vpop.eup %2332  ;;  %v1172_v2 = vmul.f32 %v2331_v15, %v2941_v20 }
 0x2ca   : > { %2346 = vrcp.f32 %v1128_v63  ;;  %v2335_v62 = vpop.eup %2334  ;;  %v1129_v37 = vadd.f32 1.0, %v2333_v19 }
 0x2cb   : > { %v2337_v21 = vpop.eup %2336  ;;  %2348 = vrcp.f32 %v1127_v18  ;;  %v1171_v29 = vmul.f32 %v2335_v62, %v2954_v10 }
 0x2cc   : > { %v2339_v5 = vpop.eup %2338  ;;  %v1130_v8 = vadd.f32 1.0, %v2337_v21  ;;  %2350 = vrcp.f32 %v1129_v37 }
 0x2cd   : > { %1227 = vrot.lane.b32.xlu0 %v3024_v24, %s2421_s24  ;;  %1301 = vrot.lane.b32.xlu1 %v1169_v13, %s2422_s12  ;;  %v1174_v20 = vmul.f32 %v2339_v5, %v2966_v14 }
 0x2ce   : > { %2352 = vrcp.f32 %v1130_v8 }
 0x2d1   : > { %1225 = vrot.lane.b32.xlu0 %v2993_v30, %s2421_s24  ;;  %1307 = vrot.lane.b32.xlu1 %v1172_v2, %s2422_s12 }
 0x2d4   : > { %v2341_v58 = vpop.eup %2340 }
 0x2d5   : > { %1305 = vrot.lane.b32.xlu1 %v1171_v29, %s2422_s12  ;;  %v1179_v9 = vmul.f32 %v2341_v58, %v2993_v30  ;;  %v2343_v38 = vpop.eup %2342 }
 0x2d6   : > { %v2345_v25 = vpop.eup %2344  ;;  %v1132_v42 = vadd.f32 1.0, %v2343_v38 }
 0x2d7   : > { %1321 = vrot.lane.b32.xlu0 %v1179_v9, %s2422_s12  ;;  %v1173_v10 = vmul.f32 %v2345_v25, %v2978_v3  ;;  %v2347_v49 = vpop.eup %2346 }
 0x2d8   : > { %2354 = vrcp.f32 %v1132_v42  ;;  %v1176_v30 = vmul.f32 %v2347_v49, %v2990_v39  ;;  %v2349_v45 = vpop.eup %2348 }
 0x2d9   : > { %1311 = vrot.lane.b32.xlu1 %v1174_v20, %s2422_s12  ;;  %v1175_v14 = vmul.f32 %v2349_v45, %v3000_v48  ;;  %v2351_v0 = vpop.eup %2350 }
 0x2da   : > { %v1177_v34 = vmul.f32 %v2351_v0, %v3008_v23 }
 0x2db   : > { %v2353_v52 = vpop.eup %2352 }
 0x2dc   : > { %v1178_v3 = vmul.f32 %v2353_v52, %v3015_v4 }
 0x2dd   : > { %1309 = vrot.lane.b32.xlu1 %v1173_v10, %s2422_s12 }
 0x2e1   : > { %1315 = vrot.lane.b32.xlu1 %v1176_v30, %s2422_s12 }
 0x2e5   : > { %1313 = vrot.lane.b32.xlu1 %v1175_v14, %s2422_s12  ;;  %v2355_v35 = vpop.eup %2354 }
 0x2e6   : > { %v1180_v39 = vmul.f32 %v2355_v35, %v3024_v24 }
 0x2e9   : > { %1317 = vrot.lane.b32.xlu1 %v1177_v34, %s2422_s12 }
 0x2ed   : > { %1319 = vrot.lane.b32.xlu1 %v1178_v3, %s2422_s12 }
 0x2f1   : > { %1323 = vrot.lane.b32.xlu1 %v1180_v39, %s2422_s12  ;;  %s2364_s12 = scalar_lea.vmem %s2363_s10, 32 }
 0x2f2   : > { %p2366_p1 = scmp.lt.s32.totalorder %s2364_s12, %s2358_s26 }
 0x2f4   : > { %p2367_p2 = por %p2366_p1, %p2365_p0 }
 0x2f6   : > { %p2368_p3 = pnand %p2367_p2, %p2361_p13 }
 0x309   : > { %v1200_v15 = vpop.permute.xlu1 %1199 }
 0x30a   : > { %v1246_v18 = vmul.f32 %v1200_v15, %v2558_v27 }
 0x30b   : > { %v1198_v22 = vpop.permute.xlu0 %1197 }
 0x30c   : > { %v1245_v19 = vmul.f32 %v1198_v22, %v2555_v26  ;;  %v1262_v24 = vadd.f32 %v1246_v18, %v2756_v7 }
 0x30e   : > { %v1261_v2 = vadd.f32 %v1245_v19, %v2746_v60 }
 0x30f   : > { %v1204_v54 = vpop.permute.xlu0 %1203 }
 0x310   : > { %v1248_v26 = vmul.f32 %v1204_v54, %v2583_v40 }
 0x312   : > { %v1264_v9 = vadd.f32 %v1248_v26, %v2765_v16 }
 0x313   : > { %v1202_v48 = vpop.permute.xlu0 %1201 }
 0x314   : > { %v1247_v5 = vmul.f32 %v1202_v48, %v2569_v33 }
 0x316   : > { %v1263_v60 = vadd.f32 %v1247_v5, %v2753_v6 }
 0x317   : > { %v1208_v1 = vpop.permute.xlu0 %1207 }
 0x318   : > { %v1250_v40 = vmul.f32 %v1208_v1, %v2599_v50 }
 0x31a   : > { %v1266_v6 = vadd.f32 %v1250_v40, %v2777_v31 }
 0x31b   : > { %v1206_v63 = vpop.permute.xlu0 %1205 }
 0x31c   : > { %v1249_v20 = vmul.f32 %v1206_v63, %v2586_v41 }
 0x31e   : > { %v1265_v42 = vadd.f32 %v1249_v20, %v2768_v17  ;;  %v3225_v20 = vlaneseq }
 0x31f   : > { %v1212_v13 = vpop.permute.xlu0 %1211 }
 0x320   : > { %v1252_v45 = vmul.f32 %v1212_v13, %v2626_v57 }
 0x322   : > { %v1268_v31 = vadd.f32 %v1252_v45, %v2789_v46 }
 0x323   : > { %v1210_v23 = vpop.permute.xlu0 %1209 }
 0x324   : > { %v1251_v41 = vmul.f32 %v1210_v23, %v2616_v55 }
 0x326   : > { %v1267_v14 = vadd.f32 %v1251_v41, %v2780_v36 }
 0x327   : > { %v1216_v62 = vpop.permute.xlu0 %1215 }
 0x328   : > { %v1254_v55 = vmul.f32 %v1216_v62, %v2566_v32 }
 0x32a   : > { %v1270_v39 = vadd.f32 %v1254_v55, %v2801_v59 }
 0x32b   : > { %v1296_v4 = vpop.permute.xlu1 %1295  ;;  %v1214_v58 = vpop.permute.xlu0 %1213 }
 0x32c   : > { %v1342_v29 = vsel %vm373_vm0, %v1262_v24, %v1296_v4  ;;  %v1253_v3 = vmul.f32 %v1214_v58, %v2561_v28 }
 0x32e   : > { %v1269_v36 = vadd.f32 %v1253_v3, %v2792_v47 }
 0x32f   : > { %v1294_v21 = vpop.permute.xlu1 %1293  ;;  %v1220_v33 = vpop.permute.xlu0 %1219 }
 0x330   : > { %v1341_v37 = vsel %vm373_vm0, %v1261_v2, %v1294_v21  ;;  %v1256_v32 = vmul.f32 %v1220_v33, %v2594_v44  ;;  %v3221_v2 = vld [vmem:[#allocation6_spill] sm:$0xff]  ;;  %v3222_v21 = vld [vmem:[#allocation8_spill] sm:$0xff]  ;;  %v3129_v33 = vand.u32 127, %v3225_v20 }
 0x331   : > { %2154 = vmatprep.mubr.msk.f32.mxu0 %vm839_vm1, %v1341_v37 }
 0x332   : > { %2155 = vmatmul.mubr.msk.f32.vlgmr.msra.gmra.mxu0 %vm839_vm1, %v1342_v29  ;;  %v1272_v59 = vadd.f32 %v1256_v32, %v2813_v11  ;;  %v3220_v11 = vld [vmem:[#allocation7_spill] sm:$0xff] }
 0x333   : > { %v1300_v27 = vpop.permute.xlu1 %1299  ;;  %v1218_v10 = vpop.permute.xlu0 %1217 }
 0x334   : > { %v1344_v8 = vsel %vm373_vm0, %v1264_v9, %v1300_v27  ;;  %v1255_v48 = vmul.f32 %v1218_v10, %v2591_v43 }
 0x336   : > { %v1271_v63 = vadd.f32 %v1255_v48, %v2804_v61 }
 0x337   : > { %v1298_v7 = vpop.permute.xlu1 %1297  ;;  %v1224_v17 = vpop.permute.xlu0 %1223 }
 0x338   : > { %v1343_v38 = vsel %vm373_vm0, %v1263_v60, %v1298_v7  ;;  %v1258_v43 = vmul.f32 %v1224_v17, %v2611_v53  ;;  %v3224_v60 = vld [vmem:[#allocation5_spill] sm:$0xff] }
 0x339   : > { %2157 = vmatprep.mubr.msk.f32.mxu0 %vm839_vm1, %v1343_v38  ;;  %v1560_v9 = vadd.s32 8, %v3224_v60  ;;  %v1561_v7 = vadd.s32 16, %v3224_v60 }
 0x33a   : > { %2158 = vmatmul.mubr.msk.f32.gmra.mxu0 %vm839_vm1, %v1344_v8  ;;  %v1274_v4 = vadd.f32 %v1258_v43, %v3220_v11  ;;  %v1581_v8 = vand.u32 127, %v3224_v60  ;;  %v1570_v11 = vadd.s32 88, %v3224_v60 }
 0x33b   : > { %v1304_v25 = vpop.permute.xlu1 %1303  ;;  %v1222_v35 = vpop.permute.xlu0 %1221  ;;  %v1588_v40 = vand.u32 127, %v1560_v9 }
 0x33c   : > { %v1346_v30 = vsel %vm373_vm0, %v1266_v6, %v1304_v25  ;;  %v1257_v47 = vmul.f32 %v1222_v35, %v2604_v51  ;;  %vm1769_vm3 = vcmp.eq.s32.totalorder %v1581_v8, %v3129_v33  ;;  %v1562_v6 = vadd.s32 24, %v3224_v60 }
 0x33d   : > { %vm1770_vm4 = vcmp.eq.s32.totalorder %v1588_v40, %v3129_v33 }
 0x33e   : > { %v1273_v18 = vadd.f32 %v1257_v47, %v2816_v12 }
 0x33f   : > { %v1302_v16 = vpop.permute.xlu1 %1301  ;;  %v1228_v28 = vpop.permute.xlu0 %1227 }
 0x340   : > { %v1345_v49 = vsel %vm373_vm0, %v1265_v42, %v1302_v16  ;;  %v1260_v62 = vmul.f32 %v1228_v28, %v3221_v2  ;;  %v1595_v42 = vand.u32 127, %v1561_v7  ;;  %v1563_v16 = vadd.s32 32, %v3224_v60 }
 0x341   : > { %2160 = vmatprep.mubr.msk.f32.mxu0 %vm839_vm1, %v1345_v49  ;;  %v1571_v2 = vadd.s32 96, %v3224_v60 }
 0x342   : > { %2161 = vmatmul.mubr.msk.f32.gmra.mxu0 %vm839_vm1, %v1346_v30  ;;  %vm1771_vm5 = vcmp.eq.s32.totalorder %v1595_v42, %v3129_v33  ;;  %v1602_v30 = vand.u32 127, %v1562_v6  ;;  %v1609_v45 = vand.u32 127, %v1563_v16 }
 0x343   : > { %v1308_v50 = vpop.permute.xlu1 %1307  ;;  %v1226_v15 = vpop.permute.xlu0 %1225 }
 0x344   : > { %v1348_v52 = vsel %vm373_vm0, %v1268_v31, %v1308_v50  ;;  %v1259_v44 = vmul.f32 %v1226_v15, %v2621_v56  ;;  %v3223_v56 = vld [vmem:[#allocation9_spill] sm:$0xff]  ;;  %v1564_v31 = vadd.s32 40, %v3224_v60  ;;  %vm1772_vm6 = vcmp.eq.s32.totalorder %v1602_v30, %v3129_v33 }
 0x345   : > { %v1276_v5 = vadd.f32 %v1260_v62, %v3223_v56  ;;  %vm1773_vm7 = vcmp.eq.s32.totalorder %v1609_v45, %v3129_v33  ;;  %v1569_v15 = vadd.s32 80, %v3224_v60  ;;  %v1665_v56 = vand.u32 127, %v1571_v2 }
 0x346   : > { %v1275_v37 = vadd.f32 %v1259_v44, %v3222_v21  ;;  %v1616_v3 = vand.u32 127, %v1564_v31  ;;  %v1572_v21 = vadd.s32 104, %v3224_v60 }
 0x347   : > { %v1306_v0 = vpop.permute.xlu1 %1305  ;;  %vm1781_vm15 = vcmp.eq.s32.totalorder %v1665_v56, %v3129_v33 }
 0x348   : > { %v1347_v34 = vsel %vm373_vm0, %v1267_v14, %v1306_v0  ;;  %v1565_v0 = vadd.s32 48, %v3224_v60  ;;  %vm1774_vm8 = vcmp.eq.s32.totalorder %v1616_v3, %v3129_v33 }
 0x349   : > { %2163 = vmatprep.mubr.msk.f32.mxu0 %vm839_vm1, %v1347_v34  ;;  %v1322_v24 = vpop.permute.xlu0 %1321 }
 0x34a   : > { %2164 = vmatmul.mubr.msk.f32.gmra.mxu0 %vm839_vm1, %v1348_v52  ;;  %v1355_v12 = vsel %vm373_vm0, %v1275_v37, %v1322_v24  ;;  %v1623_v55 = vand.u32 127, %v1565_v0  ;;  %v1658_v24 = vand.u32 127, %v1570_v11 }
 0x34b   : > { %v1312_v57 = vpop.permute.xlu1 %1311 }
 0x34c   : > { %v1350_v54 = vsel %vm373_vm0, %v1270_v39, %v1312_v57  ;;  %vm1775_vm9 = vcmp.eq.s32.totalorder %v1623_v55, %v3129_v33  ;;  %vm1780_vm14 = vcmp.eq.s32.totalorder %v1658_v24, %v3129_v33 }
 0x34f   : > { %v1310_v46 = vpop.permute.xlu1 %1309 }
 0x350   : > { %v1349_v22 = vsel %vm373_vm0, %v1269_v36, %v1310_v46  ;;  %v1566_v46 = vadd.s32 56, %v3224_v60 }
 0x351   : > { %2166 = vmatprep.mubr.msk.f32.mxu0 %vm839_vm1, %v1349_v22  ;;  %v1567_v22 = vadd.s32 64, %v3224_v60 }
 0x352   : > { %2167 = vmatmul.mubr.msk.f32.gmra.mxu0 %vm839_vm1, %v1350_v54  ;;  %v1630_v28 = vand.u32 127, %v1566_v46 }
 0x353   : > { %v1316_v1 = vpop.permute.xlu1 %1315  ;;  %v1637_v32 = vand.u32 127, %v1567_v22 }
 0x354   : > { %v1352_v19 = vsel %vm373_vm0, %v1272_v59, %v1316_v1  ;;  %v1568_v59 = vadd.s32 72, %v3224_v60  ;;  %vm1776_vm10 = vcmp.eq.s32.totalorder %v1630_v28, %v3129_v33 }
 0x355   : > { %vm1777_vm11 = vcmp.eq.s32.totalorder %v1637_v32, %v3129_v33 }
 0x356   : > { %v1644_v43 = vand.u32 127, %v1568_v59 }
 0x357   : > { %v1314_v13 = vpop.permute.xlu1 %1313 }
 0x358   : > { %v1351_v23 = vsel %vm373_vm0, %v1271_v63, %v1314_v13  ;;  %vm1778_vm12 = vcmp.eq.s32.totalorder %v1644_v43, %v3129_v33 }
 0x359   : > { %2169 = vmatprep.mubr.msk.f32.mxu0 %vm839_vm1, %v1351_v23 }
 0x35a   : > { %2170 = vmatmul.mubr.msk.f32.gmra.mxu0 %vm839_vm1, %v1352_v19 }
 0x35b   : > { %v1318_v61 = vpop.permute.xlu1 %1317 }
 0x35c   : > { %v1353_v51 = vsel %vm373_vm0, %v1273_v18, %v1318_v61  ;;  %v1651_v61 = vand.u32 127, %v1569_v15 }
 0x35d   : > { %2172 = vmatprep.mubr.msk.f32.mxu0 %vm839_vm1, %v1353_v51 }
 0x35e   : > { %vm1779_vm13 = vcmp.eq.s32.totalorder %v1651_v61, %v3129_v33 }
 0x35f   : > { %v1320_v29 = vpop.permute.xlu1 %1319 }
 0x360   : > { %v1354_v53 = vsel %vm373_vm0, %v1274_v4, %v1320_v29 }
 0x361   : > { %2173 = vmatmul.mubr.msk.f32.gmra.mxu0 %vm839_vm1, %v1354_v53 }
 0x362   : > { %2175 = vmatprep.mubr.msk.f32.mxu0 %vm839_vm1, %v1355_v12 }
 0x363   : > { %v1324_v26 = vpop.permute.xlu1 %1323 }
 0x364   : > { %v1356_v27 = vsel %vm373_vm0, %v1276_v5, %v1324_v26  ;;  %v1573_v5 = vadd.s32 112, %v3224_v60 }
 0x365   : > { %2176 = vmatmul.mubr.msk.f32.gmra.mxu0 %vm839_vm1, %v1356_v27  ;;  %v1672_v27 = vand.u32 127, %v1572_v21 }
 0x366   : > { %v1679_v7 = vand.u32 127, %v1573_v5 }
 0x367   : > { %vm1782_vm0 = vcmp.eq.s32.totalorder %v1672_v27, %v3129_v33 }
 0x368   : > { %vm1783_vm1 = vcmp.eq.s32.totalorder %v1679_v7, %v3129_v33 }
 0x3f2   : > { %v2156_v58 = vpop.f32.mrf.mxu0 }
 0x3f3   : > { %v1786_v50 = vsel %vm1770_vm4, %v2156_v58, 0.0  ;;  %v1574_v58 = vadd.s32 120, %v3224_v60 }
 0x3f4   : > { %v1479_v38 = vpop.f32.mrf.mxu0 }
 0x3f5   : > { %v1785_v49 = vsel %vm1769_vm3, %v1479_v38, 0.0  ;;  %v1686_v40 = vand.u32 127, %v1574_v58 }
 0x3f6   : > { %v1801_v17 = vadd.f32 %v1786_v50, %v1785_v49 }
 0x3f7   : > { %vm1784_vm2 = vcmp.eq.s32.totalorder %v1686_v40, %v3129_v33 }
 0x3fa   : > { %v2159_v25 = vpop.f32.mrf.mxu0 }
 0x3fb   : > { %v1788_v57 = vsel %vm1772_vm6, %v2159_v25, 0.0 }
 0x3fc   : > { %v1489_v10 = vpop.f32.mrf.mxu0 }
 0x3fd   : > { %v1787_v14 = vsel %vm1771_vm5, %v1489_v10, 0.0 }
 0x3fe   : > { %v1802_v34 = vadd.f32 %v1801_v17, %v1787_v14 }
 0x400   : > { %v1803_v39 = vadd.f32 %v1802_v34, %v1788_v57  ;;  %v1822_v34 = vld [vmem:[%s3204_s7] sm:$0x1] }
 0x402   : > { %v2162_v41 = vpop.f32.mrf.mxu0 }
 0x403   : > { %v1790_v1 = vsel %vm1774_vm8, %v2162_v41, 0.0 }
 0x404   : > { %v1499_v52 = vpop.f32.mrf.mxu0 }
 0x405   : > { %v1789_v35 = vsel %vm1773_vm7, %v1499_v52, 0.0 }
 0x406   : > { %v1804_v54 = vadd.f32 %v1803_v39, %v1789_v35 }
 0x408   : > { %v1805_v47 = vadd.f32 %v1804_v54, %v1790_v1 }
 0x40a   : > { %v2165_v36 = vpop.f32.mrf.mxu0 }
 0x40b   : > { %v1792_v18 = vsel %vm1776_vm10, %v2165_v36, 0.0 }
 0x40c   : > { %v1509_v48 = vpop.f32.mrf.mxu0 }
 0x40d   : > { %v1791_v63 = vsel %vm1775_vm9, %v1509_v48, 0.0 }
 0x40e   : > { %v1806_v23 = vadd.f32 %v1805_v47, %v1791_v63 }
 0x410   : > { %v1807_v51 = vadd.f32 %v1806_v23, %v1792_v18 }
 0x412   : > { %v2168_v13 = vpop.f32.mrf.mxu0 }
 0x413   : > { %v1794_v37 = vsel %vm1778_vm12, %v2168_v13, 0.0 }
 0x414   : > { %v1519_v19 = vpop.f32.mrf.mxu0 }
 0x415   : > { %v1793_v44 = vsel %vm1777_vm11, %v1519_v19, 0.0 }
 0x416   : > { %v1808_v4 = vadd.f32 %v1807_v51, %v1793_v44 }
 0x418   : > { %v1809_v12 = vadd.f32 %v1808_v4, %v1794_v37 }
 0x41a   : > { %v2171_v62 = vpop.f32.mrf.mxu0 }
 0x41b   : > { %v1796_v38 = vsel %vm1780_vm14, %v2171_v62, 0.0 }
 0x41c   : > { %v1529_v29 = vpop.f32.mrf.mxu0 }
 0x41d   : > { %v1795_v53 = vsel %vm1779_vm13, %v1529_v29, 0.0 }
 0x41e   : > { %v1810_v26 = vadd.f32 %v1809_v12, %v1795_v53 }
 0x420   : > { %v1811_v20 = vadd.f32 %v1810_v26, %v1796_v38 }
 0x421   : > { %v2174_v9 = vpop.f32.mrf.mxu0 }
 0x422   : > { %v1798_v16 = vsel %vm1782_vm0, %v2174_v9, 0.0 }
 0x423   : > { %v1539_v8 = vpop.f32.mrf.mxu0 }
 0x424   : > { %v1797_v25 = vsel %vm1781_vm15, %v1539_v8, 0.0 }
 0x425   : > { %v1812_v42 = vadd.f32 %v1811_v20, %v1797_v25  ;;  %v2177_v6 = vpop.f32.mrf.mxu0 }
 0x426   : > { %v1800_v41 = vsel %vm1784_vm2, %v2177_v6, 0.0 }
 0x427   : > { %v1549_v60 = vpop.f32.mrf.mxu0  ;;  %v1813_v10 = vadd.f32 %v1812_v42, %v1798_v16 }
 0x428   : > { %v1799_v49 = vsel %vm1783_vm1, %v1549_v60, 0.0 }
 0x429   : > { %v1814_v30 = vadd.f32 %v1813_v10, %v1799_v49 }
 0x42b   : > { %v1815_v45 = vadd.f32 %v1814_v30, %v1800_v41 }
 0x42d   : > { %v1816_v50 = vrot.slane %v1815_v45, 4 }
 0x42f   : > { %v1817_v14 = vadd.f32 %v1816_v50, %v1815_v45 }
 0x431   : > { %v1818_v17 = vrot.slane %v1817_v14, 2 }
 0x433   : > { %v1819_v31 = vadd.f32 %v1818_v17, %v1817_v14 }
 0x435   : > { %v1820_v0 = vrot.slane %v1819_v31, 1 }
 0x437   : > { %v1821_v52 = vadd.f32 %v1820_v0, %v1819_v31 }
 0x439   : > { %v1823_v33 = vadd.f32 %v1822_v34, %v1821_v52 }
 0x43b   : > { %2356 = vtanh.f32 %v1823_v33 }
 0x448   : > { %v2357_v3 = vpop.eup %2356 }
 0x449   : > { %v1825_v55 = vmul.f32 5.0, %v2357_v3 }
 0x44b   : > { %1826 = vst [vmem:[%s298_s18] sm:$0x1] %v1825_v55 }
 0x44c   : > { %2371 = shalt.err (!%p2368_p3)
}
 0x44d   : > { %s2372_s24 = scalar_lea.hbm %s1838_s23, 16  ;;  %s2376_s17 = scalar_lea.hbm %s3205_s8, 32 }
 0x44e   : > { %p2373_p4 = scmp.ne.s32.totalorder %s1838_s23, %s2372_s24  ;;  %p2377_p9 = scmp.lt.s32.totalorder %s1838_s23, %s3205_s8 }
 0x44f   : > { %p2378_p10 = scmp.lt.s32.totalorder %s2376_s17, %s2372_s24 }
 0x450   : > { %p2374_p7 = pnand %p2373_p4, %p2504_p5 }
 0x451   : > { %p2379_p11 = por %p2378_p10, %p2377_p9 }
 0x452   : > { %p2375_p8 = pneg %p2374_p7 }
 0x454   : > { %p2380_p12 = pnand %p2379_p11, %p2375_p8 }
 0x456   : > { %2383 = shalt.err (!%p2380_p12)
}
 0x457   : > { %2186 = dma.vmem_to_hbm [thread:$0]  (%p2504_p5), %s1841_s19, 16, %s1838_s23, %s1828_s25  }
 0x458 PF: > { %p2192_p13 = scmp.ge.s32.totalorder %s2418_s30, 2  ;;  %s1852_s22 = sand.u32 1, %s2406_s27  }
 0x459   : > { %s1853_s26 = scalar_lea.sflag [#allocation3], %s1852_s22 }
 0x45a   : > { %p2189_p0 = pnand %p2192_p13, %p2508_p6 }
 0x45c   : > { %p2190_p1 = pneg %p2189_p0 }
 0x45e   : > { %2401 = dma.done.wait (%p2190_p1), %s1853_s26, 16  }
 0x45f   : > { %2403 = vsyncadd (%p2190_p1), %s1853_s26, 4294967280  ;;  %p18_p2 = scmp.ge.s32.totalorder %s2492_s11, 4   ;;  %s3226_s27 = smov %s2410_s28 }
 0x460   : > { %s3227_s28 = smov %s2414_s29  ;;  %s3228_s29 = smov %s2502_s14 }
 0x461   : > { %s3229_s30 = smov %s2492_s11  ;;  %20 = sbr.rel (!%p18_p2) target bundleno = 3 (0x3), region = 87 }
 0x466   :  { %1857 = vsyncpa [#allocation3], 1 }
 0x467   :  { %1859 = vsyncpa [#allocation3 + $0x1], 1 }

</bundles_post_ra>
